<compile_context>
chip_gen: v7x
topology: tpu7x:2x2x1
jax: 0.10.0
libtpu: 0.0.40
codegen_flags: <defaults>
</compile_context>

<pallas_src>
import math

import jax
import jax.numpy as jnp
import numpy as np
from jax import lax
from jax.experimental import pallas as pl
from jax.experimental.pallas import tpu as pltpu

LN_EPS = 1e-5  # nn.LayerNorm default eps


def _make_kernel(L, N, E, H, num_heads):
    Dh = E // num_heads
    scale = 1.0 / math.sqrt(Dh)
    T = L * N  # total tokens

    def kernel(x_ref, r_ref, rt_ref,
               wqkv_ref, bqkv_ref,
               wo_ref, bo_ref,
               g1_ref, be1_ref,
               w1_ref, bm1_ref, w2_ref, bm2_ref,
               g2_ref, be2_ref,
               out_ref, attn_ref):
        # matmul-operand dtype for the weight matmuls (f32 or bf16); f32 accumulate.
        cdt = wqkv_ref.dtype

        # ---- seq-major -> batch-major row permutation, done as an exact 0/1
        # permutation matmul on the MXU (replaces wrapper transposes and any
        # in-kernel sublane-relayout reshape).
        x_nl = jnp.dot(r_ref[...], x_ref[...],
                       preferred_element_type=jnp.float32)                 # (T, E)

        # ---- fused Q/K/V projection: one fat MXU matmul ----------------------
        qkv = jnp.dot(x_nl.astype(cdt), wqkv_ref[...],
                      preferred_element_type=jnp.float32) + bqkv_ref[...]  # (T, 3E)

        # ---- attention: short unrolled (batch, head) loop over tiny (L, L)
        # tiles; everything else below works on the flat (T, .) token matrix.
        ctx_list = []
        for n in range(N):
            rows = slice(n * L, (n + 1) * L)              # contiguous, 8-aligned
            q_n = qkv[rows, 0 * E:1 * E] * scale          # (L, E), f32
            k_n = qkv[rows, 1 * E:2 * E]
            v_n = qkv[rows, 2 * E:3 * E]
            attn_acc = jnp.zeros((L, L), jnp.float32)
            ctx_parts = []
            for h in range(num_heads):
                cols = slice(h * Dh, (h + 1) * Dh)
                qh = q_n[:, cols]
                kh = k_n[:, cols]
                vh = v_n[:, cols]
                s = jnp.dot(qh, kh.T, preferred_element_type=jnp.float32)  # (L, L)
                s = s - jnp.max(s, axis=-1, keepdims=True)
                p = jnp.exp(s)
                # exact reciprocal: approx=True shifts results; exact is free here.
                p = p * pl.reciprocal(jnp.sum(p, axis=-1, keepdims=True),
                                      approx=False)
                attn_acc = attn_acc + p
                ctx_parts.append(jnp.dot(p, vh,
                                         preferred_element_type=jnp.float32))
            # average_attn_weights=True; all batch rows written in this one step.
            attn_ref[n] = (attn_acc * (1.0 / num_heads)).astype(attn_ref.dtype)
            ctx_list.append(jnp.concatenate(ctx_parts, axis=-1))           # (L, E)

        # ---- single out-projection on the assembled (T, E) context -----------
        ctx = jnp.concatenate(ctx_list, axis=0)                            # (T, E)
        attn_out = jnp.dot(ctx.astype(cdt), wo_ref[...],
                           preferred_element_type=jnp.float32) + bo_ref[...]

        # dropout1: identity (eval mode); layer_norm1
        mu1 = jnp.mean(attn_out, axis=-1, keepdims=True)
        var1 = jnp.mean((attn_out - mu1) ** 2, axis=-1, keepdims=True)
        h1 = (attn_out - mu1) * lax.rsqrt(var1 + LN_EPS) * g1_ref[...] + be1_ref[...]

        # MLP: Linear(E->H) -> ReLU -> (dropout: identity) -> Linear(H->E)
        m = jnp.dot(h1.astype(cdt), w1_ref[...],
                    preferred_element_type=jnp.float32) + bm1_ref[...]
        m = jnp.maximum(m, 0.0)
        m2 = jnp.dot(m.astype(cdt), w2_ref[...],
                     preferred_element_type=jnp.float32) + bm2_ref[...]

        # residual (dropout2: identity)
        y = h1 + m2

        # layer_norm2
        mu2 = jnp.mean(y, axis=-1, keepdims=True)
        var2 = jnp.mean((y - mu2) ** 2, axis=-1, keepdims=True)
        out_nl = (y - mu2) * lax.rsqrt(var2 + LN_EPS) * g2_ref[...] + be2_ref[...]

        # ---- batch-major -> seq-major (exact permutation matmul) and store ---
        out_ref[...] = jnp.dot(rt_ref[...], out_nl,
                               preferred_element_type=jnp.float32
                               ).astype(out_ref.dtype)                     # (T, E)

    return kernel


def _perm_matrices(L, N):
    """R maps seq-major (l, n) rows -> batch-major (n, l) rows; R.T maps back."""
    T = L * N
    R = np.zeros((T, T), np.float32)
    for n in range(N):
        for l in range(L):
            R[n * L + l, l * N + n] = 1.0
    return jnp.asarray(R), jnp.asarray(R.T)


def module_transformer_forward(x_lne, params, num_heads, top_k=0,
                               compute_dtype=jnp.float32):
    """x_lne: (L, N, E) float32, PyTorch MHA (seq, batch, embed) convention."""
    L, N, E = x_lne.shape
    H = params["w1"].shape[0]
    T = L * N
    cdt = compute_dtype

    row = lambda b: b.reshape(1, -1).astype(jnp.float32)  # bias/LN param -> (1, dim)

    # Fused QKV weight (E, 3E); every weight pre-transposed so all in-kernel
    # matmuls are plain (rows, in) @ (in, out).  Weights are cast to
    # compute_dtype once here (bf16 halves their VMEM/DMA footprint).
    wqkv = jnp.concatenate([params["wq"].T, params["wk"].T, params["wv"].T],
                           axis=1).astype(cdt)
    bqkv = jnp.concatenate([params["bq"], params["bk"], params["bv"]]
                           ).reshape(1, 3 * E).astype(jnp.float32)
    r_mat, rt_mat = _perm_matrices(L, N)

    kernel_args = (
        # contiguous (free) reshape — NOT a transpose; layout stays (seq, batch, embed)
        x_lne.reshape(T, E).astype(jnp.float32),
        r_mat, rt_mat,
        wqkv, bqkv,
        params["wo"].T.astype(cdt), row(params["bo"]),
        row(params["g1"]), row(params["be1"]),
        params["w1"].T.astype(cdt), row(params["bm1"]),
        params["w2"].T.astype(cdt), row(params["bm2"]),
        row(params["g2"]), row(params["be2"]),
    )

    kernel = _make_kernel(L, N, E, H, num_heads)
    vmem = lambda: pl.BlockSpec(memory_space=pltpu.MemorySpace.VMEM)

    # Single grid step: whole batch per invocation (no ~0.35us/step grid
    # overhead; token matmuls see T = N*L rows).  For large N, reintroduce a
    # batch grid axis marked "parallel" so v7x's 2 TensorCores split it.
    out_flat, attn = pl.pallas_call(
        kernel,
        out_shape=[
            jax.ShapeDtypeStruct((T, E), jnp.float32),
            jax.ShapeDtypeStruct((N, L, L), jnp.float32),
        ],
        in_specs=[vmem() for _ in kernel_args],
        out_specs=[vmem(), vmem()],
    )(*kernel_args)

    x_attend = out_flat.reshape(L, N, E)        # contiguous reshape back, no transpose

    # torch.sort(attn_matrix, dim=-1, descending=True) — plain JAX glue.
    sorted_vals = -jnp.sort(-attn, axis=-1)     # (N, L, L)
    if top_k > 0:
        # matches .values[:, :, :top_k].view(L, N, -1) (a raw reshape, not a transpose)
        x_eff = sorted_vals[:, :, :top_k].reshape(L, N, -1)
    else:
        # TODO(synk): with top_k == 0 torch returns the (values, indices) sort
        # tuple; we return the descending-sorted values only.
        x_eff = sorted_vals
    return x_attend, attn, x_eff


def reference_forward(x_lne, p, num_heads, top_k=0):
    """Pure-JAX mirror of the PyTorch module (eval mode) for validation."""
    L, N, E = x_lne.shape
    Dh = E // num_heads
    scale = 1.0 / math.sqrt(Dh)
    x = jnp.transpose(x_lne, (1, 0, 2))                               # (N, L, E)

    q = x @ p["wq"].T + p["bq"]
    k = x @ p["wk"].T + p["bk"]
    v = x @ p["wv"].T + p["bv"]
    q = q.reshape(N, L, num_heads, Dh) * scale
    k = k.reshape(N, L, num_heads, Dh)
    v = v.reshape(N, L, num_heads, Dh)
    s = jnp.einsum("nlhd,nshd->nhls", q, k)
    pw = jax.nn.softmax(s, axis=-1)
    attn_avg = jnp.mean(pw, axis=1)                                   # (N, L, L)
    ctx = jnp.einsum("nhls,nshd->nlhd", pw, v).reshape(N, L, E)
    attn_out = ctx @ p["wo"].T + p["bo"]

    def ln(z, g, b):
        mu = jnp.mean(z, -1, keepdims=True)
        var = jnp.mean((z - mu) ** 2, -1, keepdims=True)
        return (z - mu) * lax.rsqrt(var + LN_EPS) * g + b

    h1 = ln(attn_out, p["g1"], p["be1"])
    m = jnp.maximum(h1 @ p["w1"].T + p["bm1"], 0.0)
    y = h1 + (m @ p["w2"].T + p["bm2"])
    out = ln(y, p["g2"], p["be2"])
    x_attend = jnp.transpose(out, (1, 0, 2))
    sorted_vals = -jnp.sort(-attn_avg, axis=-1)
    x_eff = sorted_vals[:, :, :top_k].reshape(L, N, -1) if top_k > 0 else sorted_vals
    return x_attend, attn_avg, x_eff


def init_params(key, E, H):
    ks = jax.random.split(key, 10)
    rn = lambda k, shape, s=0.1: jax.random.normal(k, shape, jnp.float32) * s
    return {
        # nn.MultiheadAttention in_proj (split into q/k/v) + out_proj
        "wq": rn(ks[0], (E, E)), "wk": rn(ks[1], (E, E)), "wv": rn(ks[2], (E, E)),
        "bq": rn(ks[3], (E,)), "bk": rn(ks[4], (E,)), "bv": rn(ks[5], (E,)),
        "wo": rn(ks[6], (E, E)), "bo": rn(ks[7], (E,)),
        # LayerNorms
        "g1": jnp.ones((E,), jnp.float32), "be1": jnp.zeros((E,), jnp.float32),
        "g2": jnp.ones((E,), jnp.float32), "be2": jnp.zeros((E,), jnp.float32),
        # MLP
        "w1": rn(ks[8], (H, E)), "bm1": jnp.zeros((H,), jnp.float32),
        "w2": rn(ks[9], (E, H)), "bm2": jnp.zeros((E,), jnp.float32),
    }


if __name__ == "__main__":
    L, N, E, H, NUM_HEADS, TOP_K = 8, 2, 32, 64, 4, 0

    key = jax.random.PRNGKey(0)
    kx, kp = jax.random.split(key)
    x = jax.random.normal(kx, (L, N, E), jnp.float32)   # (seq, batch, embed)
    params = init_params(kp, E, H)

    # --- default f32 matmul operands: strict parity with the reference -------
    x_attend, attn_matrix, x_eff = module_transformer_forward(x, params, NUM_HEADS, TOP_K)
    jax.block_until_ready((x_attend, attn_matrix, x_eff))

    ref_out, ref_attn, ref_eff = reference_forward(x, params, NUM_HEADS, TOP_K)
    np.testing.assert_allclose(np.asarray(x_attend), np.asarray(ref_out), atol=2e-3, rtol=2e-3)
    np.testing.assert_allclose(np.asarray(attn_matrix), np.asarray(ref_attn), atol=2e-3, rtol=2e-3)
    np.testing.assert_allclose(np.asarray(x_eff), np.asarray(ref_eff), atol=2e-3, rtol=2e-3)

    # --- top_k > 0 path (sort + view), same kernel ----------------------------
    topk = 3
    _, _, x_eff_k = module_transformer_forward(x, params, NUM_HEADS, topk)
    _, _, ref_eff_k = reference_forward(x, params, NUM_HEADS, topk)
    np.testing.assert_allclose(np.asarray(x_eff_k), np.asarray(ref_eff_k), atol=2e-3, rtol=2e-3)

    # --- bf16 weight-matmul-operand variant (review item): f32 accumulation,
    # f32 softmax/LayerNorm; looser tolerance covers bf16 operand rounding. ----
    xb, ab, _ = module_transformer_forward(x, params, NUM_HEADS, TOP_K,
                                           compute_dtype=jnp.bfloat16)
    jax.block_until_ready((xb, ab))
    np.testing.assert_allclose(np.asarray(xb), np.asarray(ref_out), atol=2e-2, rtol=2e-2)
    np.testing.assert_allclose(np.asarray(ab), np.asarray(ref_attn), atol=2e-2, rtol=2e-2)

    print("KERNEL_OK")
</pallas_src>

<mosaic_0001>
module attributes {stable_mosaic.version = 11 : i64} {
  func.func @kernel(%arg0: memref<16x32xf32, #tpu.memory_space<vmem>>, %arg1: memref<16x16xf32, #tpu.memory_space<vmem>>, %arg2: memref<16x16xf32, #tpu.memory_space<vmem>>, %arg3: memref<32x96xf32, #tpu.memory_space<vmem>>, %arg4: memref<1x96xf32, #tpu.memory_space<vmem>>, %arg5: memref<32x32xf32, #tpu.memory_space<vmem>>, %arg6: memref<1x32xf32, #tpu.memory_space<vmem>>, %arg7: memref<1x32xf32, #tpu.memory_space<vmem>>, %arg8: memref<1x32xf32, #tpu.memory_space<vmem>>, %arg9: memref<32x64xf32, #tpu.memory_space<vmem>>, %arg10: memref<1x64xf32, #tpu.memory_space<vmem>>, %arg11: memref<64x32xf32, #tpu.memory_space<vmem>>, %arg12: memref<1x32xf32, #tpu.memory_space<vmem>>, %arg13: memref<1x32xf32, #tpu.memory_space<vmem>>, %arg14: memref<1x32xf32, #tpu.memory_space<vmem>>, %arg15: memref<16x32xf32, #tpu.memory_space<vmem>>, %arg16: memref<2x8x8xf32, #tpu.memory_space<vmem>>) attributes {dimension_semantics = [], scalar_prefetch = 0 : i64, scratch_operands = 0 : i64, tpu.core_type = #tpu.core_type<tc>} {
    %c0 = arith.constant 0 : index
    %c0_0 = arith.constant 0 : index
    %0 = vector.load %arg1[%c0, %c0_0] : memref<16x16xf32, #tpu.memory_space<vmem>>, vector<16x16xf32>
    %c0_1 = arith.constant 0 : index
    %c0_2 = arith.constant 0 : index
    %1 = vector.load %arg0[%c0_1, %c0_2] : memref<16x32xf32, #tpu.memory_space<vmem>>, vector<16x32xf32>
    %cst = arith.constant dense<0.000000e+00> : vector<16x32xf32>
    %2 = tpu.matmul %0, %1, %cst {dimension_numbers = #tpu.dot_dimension_numbers<[1], [0], [0], [1], [0, 0, 1, 1], [], []>} : vector<16x16xf32>, vector<16x32xf32>, vector<16x32xf32> -> vector<16x32xf32>
    %c0_3 = arith.constant 0 : index
    %c0_4 = arith.constant 0 : index
    %3 = vector.load %arg3[%c0_3, %c0_4] : memref<32x96xf32, #tpu.memory_space<vmem>>, vector<32x96xf32>
    %cst_5 = arith.constant dense<0.000000e+00> : vector<16x96xf32>
    %4 = tpu.matmul %2, %3, %cst_5 {dimension_numbers = #tpu.dot_dimension_numbers<[1], [0], [0], [1], [0, 0, 1, 1], [], []>} : vector<16x32xf32>, vector<32x96xf32>, vector<16x96xf32> -> vector<16x96xf32>
    %c0_6 = arith.constant 0 : index
    %c0_7 = arith.constant 0 : index
    %5 = vector.load %arg4[%c0_6, %c0_7] : memref<1x96xf32, #tpu.memory_space<vmem>>, vector<1x96xf32>
    %6 = vector.broadcast %5 : vector<1x96xf32> to vector<16x96xf32>
    %7 = arith.addf %4, %6 : vector<16x96xf32>
    %8 = vector.extract_strided_slice %7 {offsets = [0, 0], sizes = [8, 32], strides = [1, 1]} : vector<16x96xf32> to vector<8x32xf32>
    %cst_8 = arith.constant 0.353553385 : f32
    %9 = vector.broadcast %cst_8 : f32 to vector<8x32xf32>
    %10 = arith.mulf %8, %9 : vector<8x32xf32>
    %11 = vector.extract_strided_slice %7 {offsets = [0, 32], sizes = [8, 32], strides = [1, 1]} : vector<16x96xf32> to vector<8x32xf32>
    %12 = vector.extract_strided_slice %7 {offsets = [0, 64], sizes = [8, 32], strides = [1, 1]} : vector<16x96xf32> to vector<8x32xf32>
    %cst_9 = arith.constant 0.000000e+00 : f32
    %13 = vector.broadcast %cst_9 : f32 to vector<8x8xf32>
    %14 = vector.extract_strided_slice %10 {offsets = [0, 0], sizes = [8, 8], strides = [1, 1]} : vector<8x32xf32> to vector<8x8xf32>
    %15 = vector.extract_strided_slice %11 {offsets = [0, 0], sizes = [8, 8], strides = [1, 1]} : vector<8x32xf32> to vector<8x8xf32>
    %16 = vector.extract_strided_slice %12 {offsets = [0, 0], sizes = [8, 8], strides = [1, 1]} : vector<8x32xf32> to vector<8x8xf32>
    %17 = tpu.transpose %15, [1, 0] : vector<8x8xf32> -> vector<8x8xf32>
    %cst_10 = arith.constant dense<0.000000e+00> : vector<8x8xf32>
    %18 = tpu.matmul %14, %17, %cst_10 {dimension_numbers = #tpu.dot_dimension_numbers<[1], [0], [0], [1], [0, 0, 1, 1], [], []>} : vector<8x8xf32>, vector<8x8xf32>, vector<8x8xf32> -> vector<8x8xf32>
    %cst_11 = arith.constant dense<0xFF800000> : vector<8xf32>
    %19 = vector.multi_reduction <maximumf>, %18, %cst_11 [1] : vector<8x8xf32> to vector<8xf32>
    %20 = vector.shape_cast %19 : vector<8xf32> to vector<8x1xf32>
    %21 = vector.broadcast %20 : vector<8x1xf32> to vector<8x8xf32>
    %22 = arith.subf %18, %21 : vector<8x8xf32>
    %23 = math.exp %22 : vector<8x8xf32>
    %cst_12 = arith.constant dense<0.000000e+00> : vector<8xf32>
    %24 = vector.multi_reduction <add>, %23, %cst_12 [1] : vector<8x8xf32> to vector<8xf32>
    %25 = vector.shape_cast %24 : vector<8xf32> to vector<8x1xf32>
    %26 = tpu.reciprocal %25 : vector<8x1xf32> -> vector<8x1xf32>
    %27 = vector.broadcast %26 : vector<8x1xf32> to vector<8x8xf32>
    %28 = arith.mulf %23, %27 : vector<8x8xf32>
    %29 = arith.addf %13, %28 : vector<8x8xf32>
    %cst_13 = arith.constant dense<0.000000e+00> : vector<8x8xf32>
    %30 = tpu.matmul %28, %16, %cst_13 {dimension_numbers = #tpu.dot_dimension_numbers<[1], [0], [0], [1], [0, 0, 1, 1], [], []>} : vector<8x8xf32>, vector<8x8xf32>, vector<8x8xf32> -> vector<8x8xf32>
    %31 = vector.extract_strided_slice %10 {offsets = [0, 8], sizes = [8, 8], strides = [1, 1]} : vector<8x32xf32> to vector<8x8xf32>
    %32 = vector.extract_strided_slice %11 {offsets = [0, 8], sizes = [8, 8], strides = [1, 1]} : vector<8x32xf32> to vector<8x8xf32>
    %33 = vector.extract_strided_slice %12 {offsets = [0, 8], sizes = [8, 8], strides = [1, 1]} : vector<8x32xf32> to vector<8x8xf32>
    %34 = tpu.transpose %32, [1, 0] : vector<8x8xf32> -> vector<8x8xf32>
    %cst_14 = arith.constant dense<0.000000e+00> : vector<8x8xf32>
    %35 = tpu.matmul %31, %34, %cst_14 {dimension_numbers = #tpu.dot_dimension_numbers<[1], [0], [0], [1], [0, 0, 1, 1], [], []>} : vector<8x8xf32>, vector<8x8xf32>, vector<8x8xf32> -> vector<8x8xf32>
    %cst_15 = arith.constant dense<0xFF800000> : vector<8xf32>
    %36 = vector.multi_reduction <maximumf>, %35, %cst_15 [1] : vector<8x8xf32> to vector<8xf32>
    %37 = vector.shape_cast %36 : vector<8xf32> to vector<8x1xf32>
    %38 = vector.broadcast %37 : vector<8x1xf32> to vector<8x8xf32>
    %39 = arith.subf %35, %38 : vector<8x8xf32>
    %40 = math.exp %39 : vector<8x8xf32>
    %cst_16 = arith.constant dense<0.000000e+00> : vector<8xf32>
    %41 = vector.multi_reduction <add>, %40, %cst_16 [1] : vector<8x8xf32> to vector<8xf32>
    %42 = vector.shape_cast %41 : vector<8xf32> to vector<8x1xf32>
    %43 = tpu.reciprocal %42 : vector<8x1xf32> -> vector<8x1xf32>
    %44 = vector.broadcast %43 : vector<8x1xf32> to vector<8x8xf32>
    %45 = arith.mulf %40, %44 : vector<8x8xf32>
    %46 = arith.addf %29, %45 : vector<8x8xf32>
    %cst_17 = arith.constant dense<0.000000e+00> : vector<8x8xf32>
    %47 = tpu.matmul %45, %33, %cst_17 {dimension_numbers = #tpu.dot_dimension_numbers<[1], [0], [0], [1], [0, 0, 1, 1], [], []>} : vector<8x8xf32>, vector<8x8xf32>, vector<8x8xf32> -> vector<8x8xf32>
    %48 = vector.extract_strided_slice %10 {offsets = [0, 16], sizes = [8, 8], strides = [1, 1]} : vector<8x32xf32> to vector<8x8xf32>
    %49 = vector.extract_strided_slice %11 {offsets = [0, 16], sizes = [8, 8], strides = [1, 1]} : vector<8x32xf32> to vector<8x8xf32>
    %50 = vector.extract_strided_slice %12 {offsets = [0, 16], sizes = [8, 8], strides = [1, 1]} : vector<8x32xf32> to vector<8x8xf32>
    %51 = tpu.transpose %49, [1, 0] : vector<8x8xf32> -> vector<8x8xf32>
    %cst_18 = arith.constant dense<0.000000e+00> : vector<8x8xf32>
    %52 = tpu.matmul %48, %51, %cst_18 {dimension_numbers = #tpu.dot_dimension_numbers<[1], [0], [0], [1], [0, 0, 1, 1], [], []>} : vector<8x8xf32>, vector<8x8xf32>, vector<8x8xf32> -> vector<8x8xf32>
    %cst_19 = arith.constant dense<0xFF800000> : vector<8xf32>
    %53 = vector.multi_reduction <maximumf>, %52, %cst_19 [1] : vector<8x8xf32> to vector<8xf32>
    %54 = vector.shape_cast %53 : vector<8xf32> to vector<8x1xf32>
    %55 = vector.broadcast %54 : vector<8x1xf32> to vector<8x8xf32>
    %56 = arith.subf %52, %55 : vector<8x8xf32>
    %57 = math.exp %56 : vector<8x8xf32>
    %cst_20 = arith.constant dense<0.000000e+00> : vector<8xf32>
    %58 = vector.multi_reduction <add>, %57, %cst_20 [1] : vector<8x8xf32> to vector<8xf32>
    %59 = vector.shape_cast %58 : vector<8xf32> to vector<8x1xf32>
    %60 = tpu.reciprocal %59 : vector<8x1xf32> -> vector<8x1xf32>
    %61 = vector.broadcast %60 : vector<8x1xf32> to vector<8x8xf32>
    %62 = arith.mulf %57, %61 : vector<8x8xf32>
    %63 = arith.addf %46, %62 : vector<8x8xf32>
    %cst_21 = arith.constant dense<0.000000e+00> : vector<8x8xf32>
    %64 = tpu.matmul %62, %50, %cst_21 {dimension_numbers = #tpu.dot_dimension_numbers<[1], [0], [0], [1], [0, 0, 1, 1], [], []>} : vector<8x8xf32>, vector<8x8xf32>, vector<8x8xf32> -> vector<8x8xf32>
    %65 = vector.extract_strided_slice %10 {offsets = [0, 24], sizes = [8, 8], strides = [1, 1]} : vector<8x32xf32> to vector<8x8xf32>
    %66 = vector.extract_strided_slice %11 {offsets = [0, 24], sizes = [8, 8], strides = [1, 1]} : vector<8x32xf32> to vector<8x8xf32>
    %67 = vector.extract_strided_slice %12 {offsets = [0, 24], sizes = [8, 8], strides = [1, 1]} : vector<8x32xf32> to vector<8x8xf32>
    %68 = tpu.transpose %66, [1, 0] : vector<8x8xf32> -> vector<8x8xf32>
    %cst_22 = arith.constant dense<0.000000e+00> : vector<8x8xf32>
    %69 = tpu.matmul %65, %68, %cst_22 {dimension_numbers = #tpu.dot_dimension_numbers<[1], [0], [0], [1], [0, 0, 1, 1], [], []>} : vector<8x8xf32>, vector<8x8xf32>, vector<8x8xf32> -> vector<8x8xf32>
    %cst_23 = arith.constant dense<0xFF800000> : vector<8xf32>
    %70 = vector.multi_reduction <maximumf>, %69, %cst_23 [1] : vector<8x8xf32> to vector<8xf32>
    %71 = vector.shape_cast %70 : vector<8xf32> to vector<8x1xf32>
    %72 = vector.broadcast %71 : vector<8x1xf32> to vector<8x8xf32>
    %73 = arith.subf %69, %72 : vector<8x8xf32>
    %74 = math.exp %73 : vector<8x8xf32>
    %cst_24 = arith.constant dense<0.000000e+00> : vector<8xf32>
    %75 = vector.multi_reduction <add>, %74, %cst_24 [1] : vector<8x8xf32> to vector<8xf32>
    %76 = vector.shape_cast %75 : vector<8xf32> to vector<8x1xf32>
    %77 = tpu.reciprocal %76 : vector<8x1xf32> -> vector<8x1xf32>
    %78 = vector.broadcast %77 : vector<8x1xf32> to vector<8x8xf32>
    %79 = arith.mulf %74, %78 : vector<8x8xf32>
    %80 = arith.addf %63, %79 : vector<8x8xf32>
    %cst_25 = arith.constant dense<0.000000e+00> : vector<8x8xf32>
    %81 = tpu.matmul %79, %67, %cst_25 {dimension_numbers = #tpu.dot_dimension_numbers<[1], [0], [0], [1], [0, 0, 1, 1], [], []>} : vector<8x8xf32>, vector<8x8xf32>, vector<8x8xf32> -> vector<8x8xf32>
    %cst_26 = arith.constant 2.500000e-01 : f32
    %82 = vector.broadcast %cst_26 : f32 to vector<8x8xf32>
    %83 = arith.mulf %80, %82 : vector<8x8xf32>
    %c0_27 = arith.constant 0 : index
    %c0_28 = arith.constant 0 : index
    %c0_29 = arith.constant 0 : index
    %84 = vector.load %arg16[%c0_27, %c0_28, %c0_29] : memref<2x8x8xf32, #tpu.memory_space<vmem>>, vector<1x8x8xf32>
    %85 = vector.shape_cast %84 : vector<1x8x8xf32> to vector<8x8xf32>
    %86 = vector.shape_cast %83 : vector<8x8xf32> to vector<1x8x8xf32>
    tpu.vector_store %arg16[%c0_27, %c0_28, %c0_29], %86 {strides = array<i32>} : memref<2x8x8xf32, #tpu.memory_space<vmem>>, vector<1x8x8xf32>,
    %87 = tpu.concatenate %30, %47, %64, %81 in 1 : vector<8x8xf32>, vector<8x8xf32>, vector<8x8xf32>, vector<8x8xf32> -> vector<8x32xf32>
    %88 = vector.extract_strided_slice %7 {offsets = [8, 0], sizes = [8, 32], strides = [1, 1]} : vector<16x96xf32> to vector<8x32xf32>
    %cst_30 = arith.constant 0.353553385 : f32
    %89 = vector.broadcast %cst_30 : f32 to vector<8x32xf32>
    %90 = arith.mulf %88, %89 : vector<8x32xf32>
    %91 = vector.extract_strided_slice %7 {offsets = [8, 32], sizes = [8, 32], strides = [1, 1]} : vector<16x96xf32> to vector<8x32xf32>
    %92 = vector.extract_strided_slice %7 {offsets = [8, 64], sizes = [8, 32], strides = [1, 1]} : vector<16x96xf32> to vector<8x32xf32>
    %cst_31 = arith.constant 0.000000e+00 : f32
    %93 = vector.broadcast %cst_31 : f32 to vector<8x8xf32>
    %94 = vector.extract_strided_slice %90 {offsets = [0, 0], sizes = [8, 8], strides = [1, 1]} : vector<8x32xf32> to vector<8x8xf32>
    %95 = vector.extract_strided_slice %91 {offsets = [0, 0], sizes = [8, 8], strides = [1, 1]} : vector<8x32xf32> to vector<8x8xf32>
    %96 = vector.extract_strided_slice %92 {offsets = [0, 0], sizes = [8, 8], strides = [1, 1]} : vector<8x32xf32> to vector<8x8xf32>
    %97 = tpu.transpose %95, [1, 0] : vector<8x8xf32> -> vector<8x8xf32>
    %cst_32 = arith.constant dense<0.000000e+00> : vector<8x8xf32>
    %98 = tpu.matmul %94, %97, %cst_32 {dimension_numbers = #tpu.dot_dimension_numbers<[1], [0], [0], [1], [0, 0, 1, 1], [], []>} : vector<8x8xf32>, vector<8x8xf32>, vector<8x8xf32> -> vector<8x8xf32>
    %cst_33 = arith.constant dense<0xFF800000> : vector<8xf32>
    %99 = vector.multi_reduction <maximumf>, %98, %cst_33 [1] : vector<8x8xf32> to vector<8xf32>
    %100 = vector.shape_cast %99 : vector<8xf32> to vector<8x1xf32>
    %101 = vector.broadcast %100 : vector<8x1xf32> to vector<8x8xf32>
    %102 = arith.subf %98, %101 : vector<8x8xf32>
    %103 = math.exp %102 : vector<8x8xf32>
    %cst_34 = arith.constant dense<0.000000e+00> : vector<8xf32>
    %104 = vector.multi_reduction <add>, %103, %cst_34 [1] : vector<8x8xf32> to vector<8xf32>
    %105 = vector.shape_cast %104 : vector<8xf32> to vector<8x1xf32>
    %106 = tpu.reciprocal %105 : vector<8x1xf32> -> vector<8x1xf32>
    %107 = vector.broadcast %106 : vector<8x1xf32> to vector<8x8xf32>
    %108 = arith.mulf %103, %107 : vector<8x8xf32>
    %109 = arith.addf %93, %108 : vector<8x8xf32>
    %cst_35 = arith.constant dense<0.000000e+00> : vector<8x8xf32>
    %110 = tpu.matmul %108, %96, %cst_35 {dimension_numbers = #tpu.dot_dimension_numbers<[1], [0], [0], [1], [0, 0, 1, 1], [], []>} : vector<8x8xf32>, vector<8x8xf32>, vector<8x8xf32> -> vector<8x8xf32>
    %111 = vector.extract_strided_slice %90 {offsets = [0, 8], sizes = [8, 8], strides = [1, 1]} : vector<8x32xf32> to vector<8x8xf32>
    %112 = vector.extract_strided_slice %91 {offsets = [0, 8], sizes = [8, 8], strides = [1, 1]} : vector<8x32xf32> to vector<8x8xf32>
    %113 = vector.extract_strided_slice %92 {offsets = [0, 8], sizes = [8, 8], strides = [1, 1]} : vector<8x32xf32> to vector<8x8xf32>
    %114 = tpu.transpose %112, [1, 0] : vector<8x8xf32> -> vector<8x8xf32>
    %cst_36 = arith.constant dense<0.000000e+00> : vector<8x8xf32>
    %115 = tpu.matmul %111, %114, %cst_36 {dimension_numbers = #tpu.dot_dimension_numbers<[1], [0], [0], [1], [0, 0, 1, 1], [], []>} : vector<8x8xf32>, vector<8x8xf32>, vector<8x8xf32> -> vector<8x8xf32>
    %cst_37 = arith.constant dense<0xFF800000> : vector<8xf32>
    %116 = vector.multi_reduction <maximumf>, %115, %cst_37 [1] : vector<8x8xf32> to vector<8xf32>
    %117 = vector.shape_cast %116 : vector<8xf32> to vector<8x1xf32>
    %118 = vector.broadcast %117 : vector<8x1xf32> to vector<8x8xf32>
    %119 = arith.subf %115, %118 : vector<8x8xf32>
    %120 = math.exp %119 : vector<8x8xf32>
    %cst_38 = arith.constant dense<0.000000e+00> : vector<8xf32>
    %121 = vector.multi_reduction <add>, %120, %cst_38 [1] : vector<8x8xf32> to vector<8xf32>
    %122 = vector.shape_cast %121 : vector<8xf32> to vector<8x1xf32>
    %123 = tpu.reciprocal %122 : vector<8x1xf32> -> vector<8x1xf32>
    %124 = vector.broadcast %123 : vector<8x1xf32> to vector<8x8xf32>
    %125 = arith.mulf %120, %124 : vector<8x8xf32>
    %126 = arith.addf %109, %125 : vector<8x8xf32>
    %cst_39 = arith.constant dense<0.000000e+00> : vector<8x8xf32>
    %127 = tpu.matmul %125, %113, %cst_39 {dimension_numbers = #tpu.dot_dimension_numbers<[1], [0], [0], [1], [0, 0, 1, 1], [], []>} : vector<8x8xf32>, vector<8x8xf32>, vector<8x8xf32> -> vector<8x8xf32>
    %128 = vector.extract_strided_slice %90 {offsets = [0, 16], sizes = [8, 8], strides = [1, 1]} : vector<8x32xf32> to vector<8x8xf32>
    %129 = vector.extract_strided_slice %91 {offsets = [0, 16], sizes = [8, 8], strides = [1, 1]} : vector<8x32xf32> to vector<8x8xf32>
    %130 = vector.extract_strided_slice %92 {offsets = [0, 16], sizes = [8, 8], strides = [1, 1]} : vector<8x32xf32> to vector<8x8xf32>
    %131 = tpu.transpose %129, [1, 0] : vector<8x8xf32> -> vector<8x8xf32>
    %cst_40 = arith.constant dense<0.000000e+00> : vector<8x8xf32>
    %132 = tpu.matmul %128, %131, %cst_40 {dimension_numbers = #tpu.dot_dimension_numbers<[1], [0], [0], [1], [0, 0, 1, 1], [], []>} : vector<8x8xf32>, vector<8x8xf32>, vector<8x8xf32> -> vector<8x8xf32>
    %cst_41 = arith.constant dense<0xFF800000> : vector<8xf32>
    %133 = vector.multi_reduction <maximumf>, %132, %cst_41 [1] : vector<8x8xf32> to vector<8xf32>
    %134 = vector.shape_cast %133 : vector<8xf32> to vector<8x1xf32>
    %135 = vector.broadcast %134 : vector<8x1xf32> to vector<8x8xf32>
    %136 = arith.subf %132, %135 : vector<8x8xf32>
    %137 = math.exp %136 : vector<8x8xf32>
    %cst_42 = arith.constant dense<0.000000e+00> : vector<8xf32>
    %138 = vector.multi_reduction <add>, %137, %cst_42 [1] : vector<8x8xf32> to vector<8xf32>
    %139 = vector.shape_cast %138 : vector<8xf32> to vector<8x1xf32>
    %140 = tpu.reciprocal %139 : vector<8x1xf32> -> vector<8x1xf32>
    %141 = vector.broadcast %140 : vector<8x1xf32> to vector<8x8xf32>
    %142 = arith.mulf %137, %141 : vector<8x8xf32>
    %143 = arith.addf %126, %142 : vector<8x8xf32>
    %cst_43 = arith.constant dense<0.000000e+00> : vector<8x8xf32>
    %144 = tpu.matmul %142, %130, %cst_43 {dimension_numbers = #tpu.dot_dimension_numbers<[1], [0], [0], [1], [0, 0, 1, 1], [], []>} : vector<8x8xf32>, vector<8x8xf32>, vector<8x8xf32> -> vector<8x8xf32>
    %145 = vector.extract_strided_slice %90 {offsets = [0, 24], sizes = [8, 8], strides = [1, 1]} : vector<8x32xf32> to vector<8x8xf32>
    %146 = vector.extract_strided_slice %91 {offsets = [0, 24], sizes = [8, 8], strides = [1, 1]} : vector<8x32xf32> to vector<8x8xf32>
    %147 = vector.extract_strided_slice %92 {offsets = [0, 24], sizes = [8, 8], strides = [1, 1]} : vector<8x32xf32> to vector<8x8xf32>
    %148 = tpu.transpose %146, [1, 0] : vector<8x8xf32> -> vector<8x8xf32>
    %cst_44 = arith.constant dense<0.000000e+00> : vector<8x8xf32>
    %149 = tpu.matmul %145, %148, %cst_44 {dimension_numbers = #tpu.dot_dimension_numbers<[1], [0], [0], [1], [0, 0, 1, 1], [], []>} : vector<8x8xf32>, vector<8x8xf32>, vector<8x8xf32> -> vector<8x8xf32>
    %cst_45 = arith.constant dense<0xFF800000> : vector<8xf32>
    %150 = vector.multi_reduction <maximumf>, %149, %cst_45 [1] : vector<8x8xf32> to vector<8xf32>
    %151 = vector.shape_cast %150 : vector<8xf32> to vector<8x1xf32>
    %152 = vector.broadcast %151 : vector<8x1xf32> to vector<8x8xf32>
    %153 = arith.subf %149, %152 : vector<8x8xf32>
    %154 = math.exp %153 : vector<8x8xf32>
    %cst_46 = arith.constant dense<0.000000e+00> : vector<8xf32>
    %155 = vector.multi_reduction <add>, %154, %cst_46 [1] : vector<8x8xf32> to vector<8xf32>
    %156 = vector.shape_cast %155 : vector<8xf32> to vector<8x1xf32>
    %157 = tpu.reciprocal %156 : vector<8x1xf32> -> vector<8x1xf32>
    %158 = vector.broadcast %157 : vector<8x1xf32> to vector<8x8xf32>
    %159 = arith.mulf %154, %158 : vector<8x8xf32>
    %160 = arith.addf %143, %159 : vector<8x8xf32>
    %cst_47 = arith.constant dense<0.000000e+00> : vector<8x8xf32>
    %161 = tpu.matmul %159, %147, %cst_47 {dimension_numbers = #tpu.dot_dimension_numbers<[1], [0], [0], [1], [0, 0, 1, 1], [], []>} : vector<8x8xf32>, vector<8x8xf32>, vector<8x8xf32> -> vector<8x8xf32>
    %cst_48 = arith.constant 2.500000e-01 : f32
    %162 = vector.broadcast %cst_48 : f32 to vector<8x8xf32>
    %163 = arith.mulf %160, %162 : vector<8x8xf32>
    %c1 = arith.constant 1 : index
    %c0_49 = arith.constant 0 : index
    %c0_50 = arith.constant 0 : index
    %164 = vector.load %arg16[%c1, %c0_49, %c0_50] : memref<2x8x8xf32, #tpu.memory_space<vmem>>, vector<1x8x8xf32>
    %165 = vector.shape_cast %164 : vector<1x8x8xf32> to vector<8x8xf32>
    %166 = vector.shape_cast %163 : vector<8x8xf32> to vector<1x8x8xf32>
    tpu.vector_store %arg16[%c1, %c0_49, %c0_50], %166 {strides = array<i32>} : memref<2x8x8xf32, #tpu.memory_space<vmem>>, vector<1x8x8xf32>,
    %167 = tpu.concatenate %110, %127, %144, %161 in 1 : vector<8x8xf32>, vector<8x8xf32>, vector<8x8xf32>, vector<8x8xf32> -> vector<8x32xf32>
    %168 = tpu.concatenate %87, %167 in 0 : vector<8x32xf32>, vector<8x32xf32> -> vector<16x32xf32>
    %c0_51 = arith.constant 0 : index
    %c0_52 = arith.constant 0 : index
    %169 = vector.load %arg5[%c0_51, %c0_52] : memref<32x32xf32, #tpu.memory_space<vmem>>, vector<32x32xf32>
    %cst_53 = arith.constant dense<0.000000e+00> : vector<16x32xf32>
    %170 = tpu.matmul %168, %169, %cst_53 {dimension_numbers = #tpu.dot_dimension_numbers<[1], [0], [0], [1], [0, 0, 1, 1], [], []>} : vector<16x32xf32>, vector<32x32xf32>, vector<16x32xf32> -> vector<16x32xf32>
    %c0_54 = arith.constant 0 : index
    %c0_55 = arith.constant 0 : index
    %171 = vector.load %arg6[%c0_54, %c0_55] : memref<1x32xf32, #tpu.memory_space<vmem>>, vector<1x32xf32>
    %172 = vector.broadcast %171 : vector<1x32xf32> to vector<16x32xf32>
    %173 = arith.addf %170, %172 : vector<16x32xf32>
    %cst_56 = arith.constant dense<0.000000e+00> : vector<16xf32>
    %174 = vector.multi_reduction <add>, %173, %cst_56 [1] : vector<16x32xf32> to vector<16xf32>
    %175 = vector.shape_cast %174 : vector<16xf32> to vector<16x1xf32>
    %cst_57 = arith.constant 3.200000e+01 : f32
    %176 = vector.broadcast %cst_57 : f32 to vector<16x1xf32>
    %177 = arith.divf %175, %176 : vector<16x1xf32>
    %178 = vector.broadcast %177 : vector<16x1xf32> to vector<16x32xf32>
    %179 = arith.subf %173, %178 : vector<16x32xf32>
    %180 = arith.mulf %179, %179 : vector<16x32xf32>
    %cst_58 = arith.constant dense<0.000000e+00> : vector<16xf32>
    %181 = vector.multi_reduction <add>, %180, %cst_58 [1] : vector<16x32xf32> to vector<16xf32>
    %182 = vector.shape_cast %181 : vector<16xf32> to vector<16x1xf32>
    %cst_59 = arith.constant 3.200000e+01 : f32
    %183 = vector.broadcast %cst_59 : f32 to vector<16x1xf32>
    %184 = arith.divf %182, %183 : vector<16x1xf32>
    %185 = vector.broadcast %177 : vector<16x1xf32> to vector<16x32xf32>
    %186 = arith.subf %173, %185 : vector<16x32xf32>
    %cst_60 = arith.constant 9.99999974E-6 : f32
    %187 = vector.broadcast %cst_60 : f32 to vector<16x1xf32>
    %188 = arith.addf %184, %187 : vector<16x1xf32>
    %189 = math.rsqrt %188 : vector<16x1xf32>
    %190 = vector.broadcast %189 : vector<16x1xf32> to vector<16x32xf32>
    %191 = arith.mulf %186, %190 : vector<16x32xf32>
    %c0_61 = arith.constant 0 : index
    %c0_62 = arith.constant 0 : index
    %192 = vector.load %arg7[%c0_61, %c0_62] : memref<1x32xf32, #tpu.memory_space<vmem>>, vector<1x32xf32>
    %193 = vector.broadcast %192 : vector<1x32xf32> to vector<16x32xf32>
    %194 = arith.mulf %191, %193 : vector<16x32xf32>
    %c0_63 = arith.constant 0 : index
    %c0_64 = arith.constant 0 : index
    %195 = vector.load %arg8[%c0_63, %c0_64] : memref<1x32xf32, #tpu.memory_space<vmem>>, vector<1x32xf32>
    %196 = vector.broadcast %195 : vector<1x32xf32> to vector<16x32xf32>
    %197 = arith.addf %194, %196 : vector<16x32xf32>
    %c0_65 = arith.constant 0 : index
    %c0_66 = arith.constant 0 : index
    %198 = vector.load %arg9[%c0_65, %c0_66] : memref<32x64xf32, #tpu.memory_space<vmem>>, vector<32x64xf32>
    %cst_67 = arith.constant dense<0.000000e+00> : vector<16x64xf32>
    %199 = tpu.matmul %197, %198, %cst_67 {dimension_numbers = #tpu.dot_dimension_numbers<[1], [0], [0], [1], [0, 0, 1, 1], [], []>} : vector<16x32xf32>, vector<32x64xf32>, vector<16x64xf32> -> vector<16x64xf32>
    %c0_68 = arith.constant 0 : index
    %c0_69 = arith.constant 0 : index
    %200 = vector.load %arg10[%c0_68, %c0_69] : memref<1x64xf32, #tpu.memory_space<vmem>>, vector<1x64xf32>
    %201 = vector.broadcast %200 : vector<1x64xf32> to vector<16x64xf32>
    %202 = arith.addf %199, %201 : vector<16x64xf32>
    %cst_70 = arith.constant 0.000000e+00 : f32
    %203 = vector.broadcast %cst_70 : f32 to vector<16x64xf32>
    %204 = arith.maximumf %202, %203 : vector<16x64xf32>
    %c0_71 = arith.constant 0 : index
    %c0_72 = arith.constant 0 : index
    %205 = vector.load %arg11[%c0_71, %c0_72] : memref<64x32xf32, #tpu.memory_space<vmem>>, vector<64x32xf32>
    %cst_73 = arith.constant dense<0.000000e+00> : vector<16x32xf32>
    %206 = tpu.matmul %204, %205, %cst_73 {dimension_numbers = #tpu.dot_dimension_numbers<[1], [0], [0], [1], [0, 0, 1, 1], [], []>} : vector<16x64xf32>, vector<64x32xf32>, vector<16x32xf32> -> vector<16x32xf32>
    %c0_74 = arith.constant 0 : index
    %c0_75 = arith.constant 0 : index
    %207 = vector.load %arg12[%c0_74, %c0_75] : memref<1x32xf32, #tpu.memory_space<vmem>>, vector<1x32xf32>
    %208 = vector.broadcast %207 : vector<1x32xf32> to vector<16x32xf32>
    %209 = arith.addf %206, %208 : vector<16x32xf32>
    %210 = arith.addf %197, %209 : vector<16x32xf32>
    %cst_76 = arith.constant dense<0.000000e+00> : vector<16xf32>
    %211 = vector.multi_reduction <add>, %210, %cst_76 [1] : vector<16x32xf32> to vector<16xf32>
    %212 = vector.shape_cast %211 : vector<16xf32> to vector<16x1xf32>
    %cst_77 = arith.constant 3.200000e+01 : f32
    %213 = vector.broadcast %cst_77 : f32 to vector<16x1xf32>
    %214 = arith.divf %212, %213 : vector<16x1xf32>
    %215 = vector.broadcast %214 : vector<16x1xf32> to vector<16x32xf32>
    %216 = arith.subf %210, %215 : vector<16x32xf32>
    %217 = arith.mulf %216, %216 : vector<16x32xf32>
    %cst_78 = arith.constant dense<0.000000e+00> : vector<16xf32>
    %218 = vector.multi_reduction <add>, %217, %cst_78 [1] : vector<16x32xf32> to vector<16xf32>
    %219 = vector.shape_cast %218 : vector<16xf32> to vector<16x1xf32>
    %cst_79 = arith.constant 3.200000e+01 : f32
    %220 = vector.broadcast %cst_79 : f32 to vector<16x1xf32>
    %221 = arith.divf %219, %220 : vector<16x1xf32>
    %222 = vector.broadcast %214 : vector<16x1xf32> to vector<16x32xf32>
    %223 = arith.subf %210, %222 : vector<16x32xf32>
    %cst_80 = arith.constant 9.99999974E-6 : f32
    %224 = vector.broadcast %cst_80 : f32 to vector<16x1xf32>
    %225 = arith.addf %221, %224 : vector<16x1xf32>
    %226 = math.rsqrt %225 : vector<16x1xf32>
    %227 = vector.broadcast %226 : vector<16x1xf32> to vector<16x32xf32>
    %228 = arith.mulf %223, %227 : vector<16x32xf32>
    %c0_81 = arith.constant 0 : index
    %c0_82 = arith.constant 0 : index
    %229 = vector.load %arg13[%c0_81, %c0_82] : memref<1x32xf32, #tpu.memory_space<vmem>>, vector<1x32xf32>
    %230 = vector.broadcast %229 : vector<1x32xf32> to vector<16x32xf32>
    %231 = arith.mulf %228, %230 : vector<16x32xf32>
    %c0_83 = arith.constant 0 : index
    %c0_84 = arith.constant 0 : index
    %232 = vector.load %arg14[%c0_83, %c0_84] : memref<1x32xf32, #tpu.memory_space<vmem>>, vector<1x32xf32>
    %233 = vector.broadcast %232 : vector<1x32xf32> to vector<16x32xf32>
    %234 = arith.addf %231, %233 : vector<16x32xf32>
    %c0_85 = arith.constant 0 : index
    %c0_86 = arith.constant 0 : index
    %235 = vector.load %arg2[%c0_85, %c0_86] : memref<16x16xf32, #tpu.memory_space<vmem>>, vector<16x16xf32>
    %cst_87 = arith.constant dense<0.000000e+00> : vector<16x32xf32>
    %236 = tpu.matmul %235, %234, %cst_87 {dimension_numbers = #tpu.dot_dimension_numbers<[1], [0], [0], [1], [0, 0, 1, 1], [], []>} : vector<16x16xf32>, vector<16x32xf32>, vector<16x32xf32> -> vector<16x32xf32>
    %c0_88 = arith.constant 0 : index
    %c0_89 = arith.constant 0 : index
    %237 = vector.load %arg15[%c0_88, %c0_89] : memref<16x32xf32, #tpu.memory_space<vmem>>, vector<16x32xf32>
    tpu.vector_store %arg15[%c0_88, %c0_89], %236 {strides = array<i32>} : memref<16x32xf32, #tpu.memory_space<vmem>>, vector<16x32xf32>,
    return
  }
}

</mosaic_0001>

<bundles_post_ra>
// kernel: tpu_custom_call.1
= control target key start
LH: loop header
LB: loop body
LE: loop exit
PB: predicated region body
PF: predicated region fallthrough
CT: control target
= control target key end

     0   :  { %s3060_s0 = inlined_call_operand.hbm [shape: f32[16,32], index: 0, kind: input, shape index: {}]   ;;  %s3061_s1 = inlined_call_operand.hbm [shape: f32[16,16], index: 1, kind: input, shape index: {}]   ;;  %s3062_s2 = inlined_call_operand.hbm [shape: f32[16,16], index: 2, kind: input, shape index: {}]   ;;  %s3063_s3 = inlined_call_operand.vmem [shape: f32[32,96], index: 3, kind: input, shape index: {}]   ;;  %s3064_s4 = inlined_call_operand.vmem [shape: f32[1,96], index: 4, kind: input, shape index: {}]   ;;  %s3065_s5 = inlined_call_operand.vmem [shape: f32[32,32], index: 5, kind: input, shape index: {}]   ;;  %s3066_s6 = inlined_call_operand.vmem [shape: f32[1,32], index: 6, kind: input, shape index: {}]   ;;  %s3067_s7 = inlined_call_operand.vmem [shape: f32[1,32], index: 7, kind: input, shape index: {}]   ;;  %s3068_s8 = inlined_call_operand.vmem [shape: f32[1,32], index: 8, kind: input, shape index: {}]   ;;  %s3069_s9 = inlined_call_operand.vmem [shape: f32[32,64], index: 9, kind: input, shape index: {}]   ;;  %s3070_s10 = inlined_call_operand.vmem [shape: f32[1,64], index: 10, kind: input, shape index: {}]   ;;  %s3071_s11 = inlined_call_operand.vmem [shape: f32[64,32], index: 11, kind: input, shape index: {}]   ;;  %s3072_s12 = inlined_call_operand.vmem [shape: f32[1,32], index: 12, kind: input, shape index: {}]   ;;  %s3073_s13 = inlined_call_operand.vmem [shape: f32[1,32], index: 13, kind: input, shape index: {}]   ;;  %s3074_s14 = inlined_call_operand.vmem [shape: f32[1,32], index: 14, kind: input, shape index: {}]   ;;  %s3075_s15 = inlined_call_operand.hbm [shape: f32[16,32], index: 15, kind: output, shape index: {0}]   ;;  %s3076_s16 = inlined_call_operand.hbm [shape: f32[2,8,8], index: 16, kind: output, shape index: {1}]  }
   0x1   :  { %3078 = sst [smem:[#allocation15_spill]] %s3060_s0 }
   0x2   :  { %22 = vsyncpa [#allocation3], 0 }
   0x3   :  { %23 = vsyncpa [#allocation6], 0 }
   0x4   :  { %24 = vsyncpa [#allocation4], 0 }
   0x5   :  { %25 = vsyncpa [#allocation10], 0  ;;  %s2620_s21 = smov [#allocation5]   ;;  %s2621_s23 = smov [#allocation2]  }
   0x6   :  { %s43_s22 = sshll.u32 %s2620_s21, 4  ;;  %s31_s24 = sshll.u32 %s2621_s23, 4  ;;  %s44_s22 = int_to_ptr.vmem [resolvable:$true] %s43_s22  ;;  %s2727_s24 = int_to_ptr.vmem [resolvable:$true] %s31_s24 }
   0x7   :  { %s2502_s27 = scalar_lea.hbm %s3061_s1, 256 }
   0x8   :  { %p2503_p0 = scmp.ne.s32.totalorder %s3061_s1, %s2502_s27  ;;  %p2506_p1 = scmp.lt.u32.totalorder %s2502_s27, %s3061_s1 }
   0xa   :  { %p2508_p2 = pnand %p2506_p1, %p2503_p0 }
   0xc   :  { %2511 = shalt.err (!%p2508_p2)
}
   0xd   :  { %s2512_s17 = scalar_lea.vmem %s44_s22, 256  ;;  %p2517_p4 = scmp.lt.s32.totalorder %s44_s22, %s44_s22 }
   0xe   :  { %p2513_p3 = scmp.ne.s32.totalorder %s44_s22, %s2512_s17  ;;  %p2518_p5 = scmp.lt.s32.totalorder %s2512_s17, %s2512_s17 }
  0x10   :  { %p2519_p6 = por %p2518_p5, %p2517_p4 }
  0x12   :  { %p2520_p7 = pnand %p2519_p6, %p2513_p3 }
  0x14   :  { %2523 = shalt.err (!%p2520_p7)
}
  0x15   :  { %s2622_s18 = smov 128   ;;  %s2623_s19 = smov 8  }
  0x16   :  { %49 = dma.hbm_to_vmem [thread:$0]  %s3061_s1, 256, %s44_s22, [#allocation6], %s2622_s18, %s2622_s18, %s2623_s19  }
  0x17   :  { %s3079_s26 = sld [smem:[#allocation15_spill]] }
  0x1d   :  { %s2524_s27 = scalar_lea.hbm %s3079_s26, 256 }
  0x1e   :  { %p2525_p8 = scmp.ne.s32.totalorder %s3079_s26, %s2524_s27  ;;  %p2528_p9 = scmp.lt.u32.totalorder %s2524_s27, %s3079_s26 }
  0x20   :  { %p2530_p10 = pnand %p2528_p9, %p2525_p8 }
  0x22   :  { %2533 = shalt.err (!%p2530_p10)
}
  0x23   :  { %s2534_s17 = scalar_lea.vmem %s2727_s24, 256  ;;  %p2539_p12 = scmp.lt.s32.totalorder %s2727_s24, %s2727_s24 }
  0x24   :  { %p2535_p11 = scmp.ne.s32.totalorder %s2727_s24, %s2534_s17  ;;  %p2540_p13 = scmp.lt.s32.totalorder %s2534_s17, %s2534_s17 }
  0x26   :  { %p2541_p0 = por %p2540_p13, %p2539_p12 }
  0x28   :  { %p2542_p1 = pnand %p2541_p0, %p2535_p11 }
  0x2a   :  { %2545 = shalt.err (!%p2542_p1)
}
  0x2b   :  { %37 = dma.hbm_to_vmem [thread:$0]  %s3079_s26, 256, %s2727_s24, [#allocation3], %s2622_s18, %s2622_s18, %s2623_s19  }
  0x2c   :  { %s2624_s20 = smov [#allocation7]   ;;  %s2546_s27 = scalar_lea.hbm %s3062_s2, 256 }
  0x2d   :  { %s55_s21 = sshll.u32 %s2624_s20, 4  ;;  %p2547_p2 = scmp.ne.s32.totalorder %s3062_s2, %s2546_s27  ;;  %s56_s21 = int_to_ptr.vmem [resolvable:$true] %s55_s21 }
  0x2e   :  { %p2550_p3 = scmp.lt.u32.totalorder %s2546_s27, %s3062_s2 }
  0x30   :  { %p2552_p4 = pnand %p2550_p3, %p2547_p2 }
  0x32   :  { %2555 = shalt.err (!%p2552_p4)
}
  0x33   :  { %s2556_s17 = scalar_lea.vmem %s56_s21, 256  ;;  %p2561_p6 = scmp.lt.s32.totalorder %s56_s21, %s56_s21 }
  0x34   :  { %p2557_p5 = scmp.ne.s32.totalorder %s56_s21, %s2556_s17  ;;  %p2562_p7 = scmp.lt.s32.totalorder %s2556_s17, %s2556_s17 }
  0x36   :  { %p2563_p8 = por %p2562_p7, %p2561_p6 }
  0x38   :  { %p2564_p9 = pnand %p2563_p8, %p2557_p5 }
  0x3a   :  { %2567 = shalt.err (!%p2564_p9)
}
  0x3b   :  { %61 = dma.hbm_to_vmem [thread:$0]  %s3062_s2, 256, %s56_s21, [#allocation6], %s2622_s18, %s2622_s18, %s2623_s19  }
  0x3c   :  { %2612 = dma.done.wait [#allocation3], 256  }
  0x3d   :  { %2613 = vsyncadd [#allocation3], 4294967040 }
  0x3e   :  { %2614 = dma.done.wait [#allocation6], 512  }
  0x3f   :  { %2615 = vsyncadd [#allocation6], 4294966784  ;;  %vm99_vm0 = vcmask 130048   ;;  %v97_v0 = vld [vmem:[#allocation2] sm:$0xff]  ;;  %v98_v1 = vld [vmem:[#allocation2 + $0x8] sm:$0xff]  ;;  %vm192_vm1 = vcmask 261120  }
  0x40   :  { %v95_v2 = vld [vmem:[#allocation5] sm:$0xff]  ;;  %v2392_v3 = vpack.c.bf16 %v98_v1, %v97_v0  ;;  %v181_v4 = vld [vmem:[%s3063_s3] sm:$0xff]  ;;  %v182_v5 = vld [vmem:[%s3063_s3 + $0x8] sm:$0xff]  ;;  %v2625_v13 = vmov 0.0   ;;  %vm2626_vm2 = vmmov 0   ;;  %s2627_s29 = smov 64  }
  0x41   :  { %2250 = vmatprep.mubr.msk.f32.mxu0 %vm99_vm0, %v95_v2  ;;  %v2396_v6 = vpack.c.bf16 %v182_v5, %v181_v4  ;;  %v183_v7 = vld [vmem:[%s3063_s3 + $0x10] sm:$0xff]  ;;  %v184_v8 = vld [vmem:[%s3063_s3 + $0x18] sm:$0xff]  ;;  %v2136_v14 = vld [vmem:[%s3064_s4] ss:$0 sm:$0xff]  ;;  %s2628_s30 = smov 96   ;;  %s2629_s0 = smov 88  }
  0x42   :  { %2393 = vmatprep.subr.bf16.mxu0 %v2392_v3  ;;  %v2400_v9 = vpack.c.bf16 %v184_v8, %v183_v7  ;;  %v96_v10 = vld [vmem:[#allocation5 + $0x8] sm:$0xff]  ;;  %s2630_s4 = smov 120   ;;  %s2631_s17 = smov 80   ;;  %vm278_vm3 = vcmask 64512   ;;  %vm956_vm4 = vcmask 195584   ;;  %vm1887_vm5 = vcmask 523264  }
  0x43   :  { %2395 = vmatpush3.bf16.msra.mxu0 %v2392_v3  ;;  %2397 = vmatprep.subr.bf16.mxu1 %v2396_v6  ;;  %s2632_s24 = smov 112   ;;  %s2633_s26 = smov 104  }
  0x44   :  { %2399 = vmatpush3.bf16.msra.mxu1 %v2396_v6  ;;  %2264 = vmatprep.subr.mxu0 %v2625_v13  ;;  %s2634_s1 = smov 72   ;;  %s2635_s22 = smov 48  }
  0x45   :  { %2401 = vmatprep.subr.bf16.mxu1 %v2400_v9  ;;  %s2636_s20 = smov 56   ;;  %s2637_s23 = smov 40  }
  0x46   :  { %2251 = vmatmul.mubr.msk.f32.vlgmr.msra.gmra.mrb[0].mxu0 %vm99_vm0, %v96_v10  ;;  %s2638_s3 = smov 16  }
  0x47   :  { %2266 = vmatprep.mubr.msk.f32.mxu0 %vm2626_vm2, %v2625_v13 }
  0x48   :  { %2403 = vmatpush3.bf16.msra.mxu1 %v2400_v9 }
  0x49   :  { %2284 = vmatprep.subr.mxu1 %v2625_v13 }
 0x119   :  { %v2252_v11 = vpop.f32.mrb[0].mxu0 }
 0x11a   :  { %v172_v12 = vpop.f32.mrb[1].mxu0 }
 0x11b   :  { %2261 = vmatprep.mubr.msk.f32.mxu1 %vm192_vm1, %v172_v12 }
 0x11c   :  { %2262 = vmatmul.mubr.msk.f32.vlgmr.msra.gmra.mrb[0].mxu1 %vm192_vm1, %v2252_v11 }
 0x11d   :  { %2286 = vmatprep.mubr.msk.f32.mxu1 %vm2626_vm2, %v2625_v13 }
 0x1ef   :  { %v2263_v15 = vpop.f32.mrb[0].mxu1 }
 0x1f0   :  { %v2804_v16 = vadd.f32 %v2263_v15, %v2136_v14  ;;  %v265_v17 = vpop.f32.mrb[1].mxu1 }
 0x1f1   :  { %v2806_v18 = vadd.f32 %v2136_v14, %v265_v17 }
 0x1f2   :  { %v958_v31 = vmul.f32 0.35355338, %v2804_v16 }
 0x1f3   :  { %366 = vrot.lane.b32.xlu1 %v2806_v18, %s2627_s29  ;;  %276 = vrot.lane.b32.xlu0 %v2806_v18, %s2628_s30  ;;  %v274_v19 = vmul.f32 0.35355338, %v2806_v18 }
 0x1f7   :  { %444 = vrot.lane.b32.xlu1 %v2806_v18, %s2629_s0 }
 0x1fb   :  { %442 = vrot.lane.b32.xlu1 %v274_v19, %s2630_s4 }
 0x1ff   :  { %610 = vrot.lane.b32.xlu1 %v2806_v18, %s2631_s17 }
 0x203   :  { %608 = vrot.lane.b32.xlu1 %v274_v19, %s2632_s24 }
 0x207   :  { %774 = vrot.lane.b32.xlu1 %v274_v19, %s2633_s26 }
 0x265   :  { %v367_v20 = vpop.permute.xlu1 %366  ;;  %v277_v21 = vpop.permute.xlu0 %276 }
 0x266   :  { %2265 = vmatpush3.xpose.msk.msra.mxu0 %vm278_vm3, %v277_v21 }
 0x267   :  { %2269 = vmatprep.subr.mxu0 %v2625_v13 }
 0x269   :  { %v445_v22 = vpop.permute.xlu1 %444  ;;  %2267 = vmatmul.mubr.msk.f32.vlgmr.msra.gmra.mrb[2].mxu0 %vm278_vm3, %v274_v19 }
 0x26a   :  { %2270 = vmatpush3.msra.mxu0 %v367_v20  ;;  %2271 = vmatprep.mubr.msk.f32.mxu0 %vm2626_vm2, %v2625_v13 }
 0x26b   :  { %2274 = vmatprep.subr.mxu0 %v2625_v13 }
 0x26d   :  { %v443_v23 = vpop.permute.xlu1 %442 }
 0x271   :  { %v611_v24 = vpop.permute.xlu1 %610 }
 0x272   :  { %2285 = vmatpush3.xpose.msk.msra.mxu1 %vm278_vm3, %v611_v24 }
 0x273   :  { %2294 = vmatprep.subr.mxu1 %v2625_v13 }
 0x275   :  { %v609_v25 = vpop.permute.xlu1 %608 }
 0x276   :  { %2287 = vmatmul.mubr.msk.f32.vlgmr.msra.gmra.mrb[2].mxu1 %vm278_vm3, %v609_v25 }
 0x277   :  { %2296 = vmatprep.mubr.msk.f32.mxu1 %vm2626_vm2, %v2625_v13 }
 0x279   :  { %v775_v37 = vpop.permute.xlu1 %774 }
 0x33c   :  { %v350_v26 = vpop.f32.mrb[2].mxu0 }
 0x33d   :  { %v2268_v27 = vpop.f32.mrb[3].mxu0  ;;  %v354_v28 = vsel %vm278_vm3, %v350_v26, -inf }
 0x33e   :  { %355 = vmax.xlane.f32.xlu0 %v354_v28 }
 0x349   :  { %v2830_v29 = vpop.f32.mrb[2].mxu1 }
 0x34a   :  { %v2288_v30 = vpop.f32.mrb[3].mxu1  ;;  %v686_v32 = vsel %vm278_vm3, %v2830_v29, -inf }
 0x354   :  { %776 = vrot.lane.b32.xlu0 %v2806_v18, %s2634_s1 }
 0x358   :  { %1291 = vrot.lane.b32.xlu0 %v958_v31, %s2632_s24 }
 0x35c   :  { %1457 = vrot.lane.b32.xlu0 %v958_v31, %s2633_s26 }
 0x37b   :  { %687 = vmax.xlane.f32.xlu0 %v686_v32 }
 0x3cb   :  { %v356_v33 = vpop.xlane.xlu0 %355 }
 0x3cc   :  { %v357_v34 = vsub.f32 %v350_v26, %v356_v33 }
 0x3ce   :  { %v358_v35 = vmul.f32 1.442695, %v357_v34 }
 0x3cf   :  { %v777_v36 = vpop.permute.xlu0 %776 }
 0x3d0   :  { %2462 = vpow2.f32 %v358_v35  ;;  %2295 = vmatpush3.xpose.msk.msra.mxu1 %vm278_vm3, %v777_v36 }
 0x3d1   :  { %2304 = vmatprep.subr.mxu1 %v2625_v13 }
 0x3d3   :  { %2297 = vmatmul.mubr.msk.f32.vlgmr.msra.gmra.mrb[4].mxu1 %vm278_vm3, %v775_v37  ;;  %v1292_v47 = vpop.permute.xlu0 %1291 }
 0x3d4   :  { %2306 = vmatprep.mubr.msk.f32.mxu1 %vm2626_vm2, %v2625_v13 }
 0x3d7   :  { %v1458_v49 = vpop.permute.xlu0 %1457 }
 0x3da   :  { %v2463_v38 = vpop.eup %2462 }
 0x3db   :  { %v360_v39 = vsel %vm278_vm3, %v2463_v38, 0.0 }
 0x3dc   :  { %361 = vadd.xlane.f32.xlu1 %v360_v39 }
 0x3ed   :  { %960 = vrot.lane.b32.xlu1 %v2804_v16, %s2628_s30 }
 0x3f1   :  { %1127 = vrot.lane.b32.xlu1 %v2804_v16, %s2629_s0 }
 0x3f5   :  { %1125 = vrot.lane.b32.xlu1 %v958_v31, %s2630_s4  ;;  %s2639_s4 = smov 24  }
 0x3f9   :  { %1293 = vrot.lane.b32.xlu1 %v2804_v16, %s2631_s17 }
 0x3fd   :  { %1459 = vrot.lane.b32.xlu1 %v2804_v16, %s2634_s1 }
 0x408   :  { %v688_v53 = vpop.xlane.xlu0 %687 }
 0x409   :  { %v689_v55 = vsub.f32 %v2830_v29, %v688_v53 }
 0x40b   :  { %v690_v59 = vmul.f32 1.442695, %v689_v55 }
 0x469   :  { %v362_v40 = vpop.xlane.xlu1 %361 }
 0x46a   :  { %2464 = vrcp.f32 %v362_v40 }
 0x46b   :  { %2466 = vpow2.f32 %v690_v59 }
 0x46d   :  { %v961_v41 = vpop.permute.xlu1 %960 }
 0x46e   :  { %2305 = vmatpush3.xpose.msk.msra.mxu1 %vm278_vm3, %v961_v41 }
 0x46f   :  { %2314 = vmatprep.subr.mxu1 %v2625_v13 }
 0x471   :  { %v1128_v42 = vpop.permute.xlu1 %1127  ;;  %2307 = vmatmul.mubr.msk.f32.vlgmr.msra.gmra.mrb[6].mxu1 %vm278_vm3, %v958_v31 }
 0x472   :  { %2315 = vmatpush3.xpose.msk.msra.mxu1 %vm278_vm3, %v1128_v42  ;;  %2316 = vmatprep.mubr.msk.f32.mxu1 %vm2626_vm2, %v2625_v13 }
 0x473   :  { %2324 = vmatprep.subr.mxu1 %v2625_v13 }
 0x474   :  { %v2465_v43 = vpop.eup %2464 }
 0x475   :  { %v2857_v44 = vmul.f32 %v2465_v43, %v2463_v38  ;;  %v1126_v45 = vpop.permute.xlu1 %1125  ;;  %v2886_v11 = vpop.eup %2466 }
 0x476   :  { %2317 = vmatmul.mubr.msk.f32.vlgmr.msra.gmra.mrb[8].mxu1 %vm278_vm3, %v1126_v45  ;;  %v692_v15 = vsel %vm278_vm3, %v2886_v11, 0.0 }
 0x477   :  { %2272 = vmatmul.mubr.msk.f32.vlgmr.msra.gmra.mrb[4].mxu0 %vm278_vm3, %v2857_v44  ;;  %2326 = vmatprep.mubr.msk.f32.mxu1 %vm2626_vm2, %v2625_v13 }
 0x478   :  { %2275 = vmatpush3.xpose.msk.msra.mxu0 %vm278_vm3, %v445_v22  ;;  %2276 = vmatprep.mubr.msk.f32.mxu0 %vm2626_vm2, %v2625_v13 }
 0x479   :  { %v1294_v46 = vpop.permute.xlu1 %1293  ;;  %2279 = vmatprep.subr.mxu0 %v2625_v13 }
 0x47a   :  { %2325 = vmatpush3.xpose.msk.msra.mxu1 %vm278_vm3, %v1294_v46 }
 0x47b   :  { %2277 = vmatmul.mubr.msk.f32.vlgmr.msra.gmra.mrb[6].mxu0 %vm278_vm3, %v443_v23  ;;  %2334 = vmatprep.subr.mxu1 %v2625_v13 }
 0x47c   :  { %2281 = vmatprep.mubr.msk.f32.mxu0 %vm2626_vm2, %v2625_v13 }
 0x47d   :  { %v1460_v48 = vpop.permute.xlu1 %1459  ;;  %2327 = vmatmul.mubr.msk.f32.vlgmr.msra.gmra.mrb[10].mxu1 %vm278_vm3, %v1292_v47 }
 0x47e   :  { %2335 = vmatpush3.xpose.msk.msra.mxu1 %vm278_vm3, %v1460_v48  ;;  %2336 = vmatprep.mubr.msk.f32.mxu1 %vm2626_vm2, %v2625_v13 }
 0x481   :  { %2337 = vmatmul.mubr.msk.f32.vlgmr.msra.gmra.mrb[12].mxu1 %vm278_vm3, %v1458_v49 }
 0x4a6   :  { %v848_v50 = vpop.f32.mrb[4].mxu1 }
 0x4a7   :  { %v2298_v51 = vpop.f32.mrb[5].mxu1  ;;  %v852_v52 = vsel %vm278_vm3, %v848_v50, -inf }
 0x4a8   :  { %853 = vmax.xlane.f32.xlu0 %v852_v52 }
 0x535   :  { %v854_v54 = vpop.xlane.xlu0 %853 }
 0x536   :  { %v855_v58 = vsub.f32 %v848_v50, %v854_v54 }
 0x538   :  { %v856_v61 = vmul.f32 1.442695, %v855_v58 }
 0x53a   :  { %2468 = vpow2.f32 %v856_v61 }
 0x544   :  { %v1033_v56 = vpop.f32.mrb[6].mxu1  ;;  %v2889_v14 = vpop.eup %2468 }
 0x545   :  { %v2308_v57 = vpop.f32.mrb[7].mxu1  ;;  %v1037_v7 = vsel %vm278_vm3, %v1033_v56, -inf  ;;  %v858_v17 = vsel %vm278_vm3, %v2889_v14, 0.0 }
 0x549   :  { %v1199_v60 = vpop.f32.mrb[8].mxu1 }
 0x54a   :  { %v2880_v62 = vpop.f32.mrb[4].mxu0  ;;  %v2318_v63 = vpop.f32.mrb[9].mxu1  ;;  %v1203_v0 = vsel %vm278_vm3, %v1199_v60, -inf }
 0x54b   :  { %1204 = vmax.xlane.f32.xlu0 %v1203_v0  ;;  %v2273_v1 = vpop.f32.mrb[5].mxu0 }
 0x54e   :  { %v516_v2 = vpop.f32.mrb[6].mxu0 }
 0x54f   :  { %v2278_v3 = vpop.f32.mrb[7].mxu0  ;;  %v520_v4 = vsel %vm278_vm3, %v516_v2, -inf }
 0x550   :  { %v1365_v5 = vpop.f32.mrb[10].mxu1  ;;  %521 = vmax.xlane.f32.xlu1 %v520_v4 }
 0x551   :  { %v2328_v6 = vpop.f32.mrb[11].mxu1  ;;  %v1369_v12 = vsel %vm278_vm3, %v1365_v5, -inf }
 0x554   :  { %v1531_v8 = vpop.f32.mrb[12].mxu1  ;;  %1038 = vmax.xlane.f32.xlu1 %v1037_v7 }
 0x555   :  { %v2338_v9 = vpop.f32.mrb[13].mxu1  ;;  %v1535_v10 = vsel %vm278_vm3, %v1531_v8, -inf }
 0x556   :  { %1536 = vmax.xlane.f32.xlu0 %v1535_v10 }
 0x558   :  { %1370 = vmax.xlane.f32.xlu1 %v1369_v12 }
 0x55a   :  { %693 = vadd.xlane.f32.xlu0 %v692_v15 }
 0x55c   :  { %859 = vadd.xlane.f32.xlu1 %v858_v17 }
 0x5d8   :  { %v1205_v19 = vpop.xlane.xlu0 %1204 }
 0x5d9   :  { %v1206_v20 = vsub.f32 %v1199_v60, %v1205_v19 }
 0x5db   :  { %v1207_v21 = vmul.f32 1.442695, %v1206_v20  ;;  %v1641_v20 = vld [vmem:[%s3065_s5] sm:$0xff] }
 0x5dd   :  { %2470 = vpow2.f32 %v1207_v21  ;;  %v522_v22 = vpop.xlane.xlu1 %521  ;;  %v1642_v21 = vld [vmem:[%s3065_s5 + $0x8] sm:$0xff] }
 0x5de   :  { %v523_v40 = vsub.f32 %v516_v2, %v522_v22 }
 0x5e0   :  { %v524_v41 = vmul.f32 1.442695, %v523_v40 }
 0x5e1   :  { %v1039_v23 = vpop.xlane.xlu1 %1038 }
 0x5e2   :  { %v1040_v24 = vsub.f32 %v1033_v56, %v1039_v23  ;;  %v2404_v23 = vpack.c.bf16 %v1642_v21, %v1641_v20 }
 0x5e3   :  { %v1537_v25 = vpop.xlane.xlu0 %1536 }
 0x5e4   :  { %v1041_v26 = vmul.f32 1.442695, %v1040_v24  ;;  %v1538_v27 = vsub.f32 %v1531_v8, %v1537_v25  ;;  %2405 = vmatprep.subr.bf16.mxu1 %v2404_v23  ;;  %v1644_v25 = vld [vmem:[%s3065_s5 + $0x18] sm:$0xff] }
 0x5e5   :  { %v1371_v28 = vpop.xlane.xlu1 %1370  ;;  %2407 = vmatpush3.bf16.msra.mxu1 %v2404_v23 }
 0x5e6   :  { %2472 = vpow2.f32 %v1041_v26  ;;  %v1539_v29 = vmul.f32 1.442695, %v1538_v27  ;;  %v1372_v30 = vsub.f32 %v1365_v5, %v1371_v28 }
 0x5e7   :  { %v2471_v31 = vpop.eup %2470  ;;  %v694_v46 = vpop.xlane.xlu0 %693 }
 0x5e8   :  { %2474 = vpow2.f32 %v1539_v29  ;;  %v1373_v32 = vmul.f32 1.442695, %v1372_v30  ;;  %v1209_v33 = vsel %vm278_vm3, %v2471_v31, 0.0 }
 0x5e9   :  { %1210 = vadd.xlane.f32.xlu1 %v1209_v33  ;;  %v860_v45 = vpop.xlane.xlu1 %859 }
 0x5ea   :  { %2476 = vpow2.f32 %v1373_v32 }
 0x5eb   :  { %2478 = vpow2.f32 %v524_v41 }
 0x5f0   :  { %v2473_v34 = vpop.eup %2472 }
 0x5f1   :  { %v1043_v35 = vsel %vm278_vm3, %v2473_v34, 0.0 }
 0x5f2   :  { %v2475_v36 = vpop.eup %2474  ;;  %1044 = vadd.xlane.f32.xlu0 %v1043_v35 }
 0x5f3   :  { %v1541_v37 = vsel %vm278_vm3, %v2475_v36, 0.0 }
 0x5f4   :  { %v2477_v38 = vpop.eup %2476  ;;  %1542 = vadd.xlane.f32.xlu1 %v1541_v37 }
 0x5f5   :  { %v1375_v39 = vsel %vm278_vm3, %v2477_v38, 0.0  ;;  %v2479_v42 = vpop.eup %2478 }
 0x5f6   :  { %1376 = vadd.xlane.f32.xlu0 %v1375_v39  ;;  %v526_v43 = vsel %vm278_vm3, %v2479_v42, 0.0 }
 0x605   :  { %698 = vrot.lane.b32.xlu1 %v2806_v18, %s2635_s22 }
 0x60c   :  { %532 = vrot.lane.b32.xlu0 %v2806_v18, %s2636_s20 }
 0x610   :  { %1049 = vrot.lane.b32.xlu0 %v2804_v16, %s2627_s29 }
 0x614   :  { %1381 = vrot.lane.b32.xlu0 %v2804_v16, %s2635_s22 }
 0x629   :  { %527 = vadd.xlane.f32.xlu1 %v526_v43 }
 0x63a   :  { %864 = vrot.lane.b32.xlu1 %v2806_v18, %s2637_s23 }
 0x63e   :  { %1215 = vrot.lane.b32.xlu1 %v2804_v16, %s2636_s20 }
 0x642   :  { %1547 = vrot.lane.b32.xlu1 %v2804_v16, %s2637_s23 }
 0x676   :  { %v1211_v47 = vpop.xlane.xlu1 %1210 }
 0x677   :  { %2480 = vrcp.f32 %v1211_v47 }
 0x67f   :  { %v1045_v48 = vpop.xlane.xlu0 %1044 }
 0x680   :  { %2482 = vrcp.f32 %v1045_v48 }
 0x681   :  { %v1543_v49 = vpop.xlane.xlu1 %1542  ;;  %v2481_v52 = vpop.eup %2480 }
 0x682   :  { %2484 = vrcp.f32 %v1543_v49  ;;  %v1213_v55 = vmul.f32 %v2481_v52, %v2471_v31 }
 0x683   :  { %v1377_v50 = vpop.xlane.xlu0 %1376 }
 0x684   :  { %2486 = vrcp.f32 %v1377_v50 }
 0x685   :  { %v699_v63 = vpop.permute.xlu1 %698  ;;  %2488 = vrcp.f32 %v694_v46 }
 0x687   :  { %v533_v51 = vpop.permute.xlu0 %532 }
 0x688   :  { %2280 = vmatpush3.msra.mxu0 %v533_v51 }
 0x689   :  { %2289 = vmatprep.subr.mxu0 %v2625_v13 }
 0x68a   :  { %v2483_v18 = vpop.eup %2482 }
 0x68b   :  { %v1047_v53 = vmul.f32 %v2483_v18, %v2473_v34 }
 0x68c   :  { %v2485_v54 = vpop.eup %2484 }
 0x68d   :  { %v1214_v57 = vadd.f32 %v1213_v55, %v1047_v53  ;;  %v1545_v58 = vmul.f32 %v2485_v54, %v2475_v36 }
 0x68e   :  { %v2487_v16 = vpop.eup %2486 }
 0x68f   :  { %v1379_v56 = vmul.f32 %v2487_v16, %v2477_v38  ;;  %v2489_v1 = vpop.eup %2488 }
 0x690   :  { %v696_v5 = vmul.f32 %v2489_v1, %v2886_v11  ;;  %v1050_v11 = vpop.permute.xlu0 %1049  ;;  %v1778_v1 = vld [vmem:[%s3069_s9] sm:$0xff] }
 0x691   :  { %v1380_v59 = vadd.f32 %v1379_v56, %v1214_v57 }
 0x693   :  { %v1546_v60 = vadd.f32 %v1545_v58, %v1380_v59 }
 0x695   :  { %v1623_v61 = vmul.f32 0.25, %v1546_v60 }
 0x697   :  { %1625 = vst.msk [vmem:[#allocation9 + $0x8] sm:$0xff] %vm278_vm3, %v1623_v61 }
 0x6b6   :  { %v528_v0 = vpop.xlane.xlu1 %527 }
 0x6b7   :  { %2490 = vrcp.f32 %v528_v0 }
 0x6b8   :  { %2492 = vrcp.f32 %v860_v45 }
 0x6ba   :  { %v865_v9 = vpop.permute.xlu1 %864 }
 0x6be   :  { %v1216_v12 = vpop.permute.xlu1 %1215 }
 0x6c1   :  { %v2491_v2 = vpop.eup %2490 }
 0x6c2   :  { %v530_v3 = vmul.f32 %v2491_v2, %v2479_v42  ;;  %v2493_v4 = vpop.eup %2492  ;;  %v1548_v15 = vpop.permute.xlu1 %1547  ;;  %v1779_v2 = vld [vmem:[%s3069_s9 + $0x8] sm:$0xff] }
 0x6c3   :  { %v862_v7 = vmul.f32 %v2493_v4, %v2889_v14  ;;  %v1382_v14 = vpop.permute.xlu0 %1381  ;;  %v1780_v4 = vld [vmem:[%s3069_s9 + $0x10] sm:$0xff] }
 0x6c4   :  { %2282 = vmatmul.mubr.msk.f32.vlgmr.msra.gmra.mrb[8].mxu0 %vm278_vm3, %v530_v3  ;;  %v531_v6 = vadd.f32 %v530_v3, %v2857_v44  ;;  %v2412_v3 = vpack.c.bf16 %v1779_v2, %v1778_v1 }
 0x6c5   :  { %2290 = vmatpush3.msra.mxu0 %v699_v63  ;;  %2291 = vmatprep.mubr.msk.f32.mxu0 %vm2626_vm2, %v2625_v13 }
 0x6c6   :  { %2299 = vmatprep.subr.mxu0 %v2625_v13  ;;  %v697_v8 = vadd.f32 %v696_v5, %v531_v6 }
 0x6c8   :  { %2292 = vmatmul.mubr.msk.f32.vlgmr.msra.gmra.mrb[10].mxu0 %vm278_vm3, %v696_v5  ;;  %v863_v10 = vadd.f32 %v862_v7, %v697_v8  ;;  %v1781_v5 = vld [vmem:[%s3069_s9 + $0x18] sm:$0xff]  ;;  %v1873_v8 = vld [vmem:[%s3071_s11 + $0x8] sm:$0xff] }
 0x6c9   :  { %2300 = vmatpush3.msra.mxu0 %v865_v9  ;;  %2301 = vmatprep.mubr.msk.f32.mxu0 %vm2626_vm2, %v2625_v13  ;;  %v2416_v6 = vpack.c.bf16 %v1781_v5, %v1780_v4  ;;  %v1874_v9 = vld [vmem:[%s3071_s11 + $0x10] sm:$0xff]  ;;  %v2174_v5 = vld [vmem:[%s3073_s13] ss:$0 sm:$0xff] }
 0x6ca   :  { %2309 = vmatprep.subr.mxu0 %v2625_v13  ;;  %v940_v44 = vmul.f32 0.25, %v863_v10 }
 0x6cc   :  { %2302 = vmatmul.mubr.msk.f32.vlgmr.msra.gmra.mrb[12].mxu0 %vm278_vm3, %v862_v7  ;;  %941 = vst.msk [vmem:[#allocation9] sm:$0xff] %vm278_vm3, %v940_v44  ;;  %v1872_v7 = vld [vmem:[%s3071_s11] sm:$0xff]  ;;  %v1875_v44 = vld [vmem:[%s3071_s11 + $0x18] sm:$0xff] }
 0x6cd   :  { %2310 = vmatpush3.msra.mxu0 %v1050_v11  ;;  %2311 = vmatprep.mubr.msk.f32.mxu0 %vm2626_vm2, %v2625_v13  ;;  %v2420_v10 = vpack.c.bf16 %v1873_v8, %v1872_v7  ;;  %v2424_v11 = vpack.c.bf16 %v1875_v44, %v1874_v9  ;;  %v2175_v9 = vld [vmem:[%s3074_s14] ss:$0 sm:$0xff] }
 0x6ce   :  { %2319 = vmatprep.subr.mxu0 %v2625_v13 }
 0x6d0   :  { %2312 = vmatmul.mubr.msk.f32.vlgmr.msra.gmra.mrb[14].mxu0 %vm278_vm3, %v1047_v53 }
 0x6d1   :  { %2320 = vmatpush3.msra.mxu0 %v1216_v12  ;;  %2321 = vmatprep.mubr.msk.f32.mxu0 %vm2626_vm2, %v2625_v13  ;;  %v1876_v12 = vld [vmem:[%s3071_s11 + $0x20] sm:$0xff] }
 0x6d2   :  { %2329 = vmatprep.subr.mxu0 %v2625_v13 }
 0x6d4   :  { %2322 = vmatmul.mubr.msk.f32.vlgmr.msra.gmra.mrb[16].mxu0 %vm278_vm3, %v1213_v55 }
 0x6d5   :  { %2330 = vmatpush3.msra.mxu0 %v1382_v14  ;;  %2331 = vmatprep.mubr.msk.f32.mxu0 %vm2626_vm2, %v2625_v13  ;;  %v1877_v14 = vld [vmem:[%s3071_s11 + $0x28] sm:$0xff] }
 0x6d6   :  { %2339 = vmatprep.subr.mxu0 %v2625_v13 }
 0x6d8   :  { %2332 = vmatmul.mubr.msk.f32.vlgmr.msra.gmra.mrb[18].mxu0 %vm278_vm3, %v1379_v56 }
 0x6d9   :  { %2340 = vmatpush3.msra.mxu0 %v1548_v15  ;;  %2341 = vmatprep.mubr.msk.f32.mxu0 %vm2626_vm2, %v2625_v13  ;;  %v1643_v13 = vld [vmem:[%s3065_s5 + $0x10] sm:$0xff]  ;;  %v2428_v15 = vpack.c.bf16 %v1877_v14, %v1876_v12 }
 0x6da   :  { %v2408_v27 = vpack.c.bf16 %v1644_v25, %v1643_v13  ;;  %2413 = vmatprep.subr.bf16.mxu0 %v2412_v3  ;;  %v2166_v13 = vld [vmem:[%s3067_s7] ss:$0 sm:$0xff] }
 0x6dc   :  { %2342 = vmatmul.mubr.msk.f32.vlgmr.msra.gmra.mrb[20].mxu0 %vm278_vm3, %v1545_v58  ;;  %2409 = vmatprep.subr.bf16.mxu1 %v2408_v27 }
 0x6dd   :  { %2411 = vmatpush3.bf16.msra.mxu1 %v2408_v27  ;;  %2415 = vmatpush3.bf16.msra.mxu0 %v2412_v3 }
 0x6de   :  { %2417 = vmatprep.subr.bf16.mxu0 %v2416_v6  ;;  %2421 = vmatprep.subr.bf16.mxu1 %v2420_v10 }
 0x6e1   :  { %2419 = vmatpush3.bf16.msra.mxu0 %v2416_v6 }
 0x797   :  { %v604_v17 = vpop.f32.mrb[8].mxu0 }
 0x798   :  { %943 = vrot.lane.b32.xlu0 %v604_v17, %s2623_s19  ;;  %v2283_v19 = vpop.f32.mrb[9].mxu0 }
 0x79b   :  { %v770_v22 = vpop.f32.mrb[10].mxu0 }
 0x79c   :  { %947 = vrot.lane.b32.xlu1 %v770_v22, %s2638_s3  ;;  %v2293_v24 = vpop.f32.mrb[11].mxu0 }
 0x79f   :  { %v936_v26 = vpop.f32.mrb[12].mxu0 }
 0x7a0   :  { %951 = vrot.lane.b32.xlu1 %v936_v26, %s2639_s4  ;;  %v2303_v28 = vpop.f32.mrb[13].mxu0  ;;  %v2167_v26 = vld [vmem:[%s3068_s8] ss:$0 sm:$0xff] }
 0x7a3   :  { %v1121_v29 = vpop.f32.mrb[14].mxu0 }
 0x7a4   :  { %v2313_v30 = vpop.f32.mrb[15].mxu0 }
 0x7a7   :  { %v1287_v31 = vpop.f32.mrb[16].mxu0 }
 0x7a8   :  { %1627 = vrot.lane.b32.xlu0 %v1287_v31, %s2623_s19  ;;  %v2323_v32 = vpop.f32.mrb[17].mxu0 }
 0x7ab   :  { %v1453_v33 = vpop.f32.mrb[18].mxu0 }
 0x7ac   :  { %1631 = vrot.lane.b32.xlu0 %v1453_v33, %s2638_s3  ;;  %v2333_v34 = vpop.f32.mrb[19].mxu0  ;;  %v1878_v33 = vld [vmem:[%s3071_s11 + $0x30] sm:$0xff]  ;;  %s2640_s3 = smov [#allocation9]  }
 0x7ad   :  { %v1879_v34 = vld [vmem:[%s3071_s11 + $0x38] sm:$0xff]  ;;  %s2117_s28 = sshll.u32 %s2640_s3, 4  ;;  %s2118_s28 = int_to_ptr.vmem [resolvable:$true] %s2117_s28 }
 0x7ae   :  { %s2568_s13 = scalar_lea.vmem %s2118_s28, 256  ;;  %p2573_p11 = scmp.lt.s32.totalorder %s2118_s28, %s2118_s28 }
 0x7af   :  { %v1619_v35 = vpop.f32.mrb[20].mxu0  ;;  %p2569_p10 = scmp.ne.s32.totalorder %s2118_s28, %s2568_s13  ;;  %p2574_p12 = scmp.lt.s32.totalorder %s2568_s13, %s2568_s13 }
 0x7b0   :  { %1635 = vrot.lane.b32.xlu1 %v1619_v35, %s2639_s4  ;;  %v2343_v36 = vpop.f32.mrb[21].mxu0  ;;  %v2432_v35 = vpack.c.bf16 %v1879_v34, %v1878_v33 }
 0x7b1   :  { %v2168_v36 = vld [vmem:[%s3070_s10] ss:$0 sm:$0xff]  ;;  %p2575_p13 = por %p2574_p12, %p2573_p11 }
 0x7b3   :  { %p2576_p0 = pnand %p2575_p13, %p2569_p10 }
 0x80a   :  { %v944_v37 = vpop.permute.xlu0 %943 }
 0x80b   :  { %v954_v39 = vsel %vm278_vm3, %v2880_v62, %v944_v37  ;;  %v2163_v62 = vld [vmem:[%s3066_s6] ss:$0 sm:$0xff] }
 0x80e   :  { %v948_v38 = vpop.permute.xlu1 %947 }
 0x80f   :  { %v955_v40 = vsel %vm99_vm0, %v954_v39, %v948_v38 }
 0x812   :  { %v952_v41 = vpop.permute.xlu1 %951 }
 0x813   :  { %v957_v42 = vsel %vm956_vm4, %v955_v40, %v952_v41 }
 0x814   :  { %2352 = vmatprep.mubr.msk.f32.mxu1 %vm192_vm1, %v957_v42 }
 0x81a   :  { %v1628_v43 = vpop.permute.xlu0 %1627 }
 0x81b   :  { %v1638_v46 = vsel %vm278_vm3, %v1121_v29, %v1628_v43  ;;  %v2171_v43 = vld [vmem:[%s3072_s12] ss:$0 sm:$0xff] }
 0x81e   :  { %v1632_v45 = vpop.permute.xlu0 %1631 }
 0x81f   :  { %v1639_v47 = vsel %vm99_vm0, %v1638_v46, %v1632_v45 }
 0x822   :  { %v1636_v48 = vpop.permute.xlu1 %1635 }
 0x823   :  { %v1640_v49 = vsel %vm956_vm4, %v1639_v47, %v1636_v48 }
 0x824   :  { %2353 = vmatmul.mubr.msk.f32.vlgmr.msra.gmra.mrb[14].mxu1 %vm192_vm1, %v1640_v49 }
 0x825   :  { %2423 = vmatpush3.bf16.msra.mxu1 %v2420_v10 }
 0x826   :  { %2425 = vmatprep.subr.bf16.mxu1 %v2424_v11 }
 0x829   :  { %2427 = vmatpush3.bf16.msra.mxu1 %v2424_v11 }
 0x82a   :  { %2429 = vmatprep.subr.bf16.mxu1 %v2428_v15 }
 0x82d   :  { %2431 = vmatpush3.bf16.msra.mxu1 %v2428_v15  ;;  %v2016_v15 = vld [vmem:[#allocation7 + $0x8] sm:$0xff] }
 0x82e   :  { %2433 = vmatprep.subr.bf16.mxu1 %v2432_v35 }
 0x831   :  { %2435 = vmatpush3.bf16.msra.mxu1 %v2432_v35 }
 0x8f7   :  { %v2354_v50 = vpop.f32.mrb[14].mxu1 }
 0x8f8   :  { %v1730_v51 = vadd.f32 %v2354_v50, %v2163_v62  ;;  %v1724_v52 = vpop.f32.mrb[15].mxu1 }
 0x8f9   :  { %v1725_v18 = vadd.f32 %v2163_v62, %v1724_v52 }
 0x8fa   :  { %v1736_v53 = vsel %vm192_vm1, %v1730_v51, 0.0 }
 0x8fb   :  { %1737 = vadd.xlane.f32.xlu1 %v1736_v53  ;;  %v1733_v54 = vsel %vm192_vm1, %v1725_v18, 0.0 }
 0x8fc   :  { %1734 = vadd.xlane.f32.xlu0 %v1733_v54 }
 0x988   :  { %v1738_v55 = vpop.xlane.xlu1 %1737 }
 0x989   :  { %v1741_v16 = vmul.f32 0.03125, %v1738_v55  ;;  %v1735_v56 = vpop.xlane.xlu0 %1734 }
 0x98a   :  { %v1740_v57 = vmul.f32 0.03125, %v1735_v56 }
 0x98b   :  { %v1743_v58 = vsub.f32 %v1730_v51, %v1741_v16 }
 0x98c   :  { %v1742_v59 = vsub.f32 %v1725_v18, %v1740_v57 }
 0x98d   :  { %v1745_v63 = vmul.f32 %v1743_v58, %v1743_v58 }
 0x98e   :  { %v1744_v60 = vmul.f32 %v1742_v59, %v1742_v59 }
 0x98f   :  { %v1749_v0 = vsel %vm192_vm1, %v1745_v63, 0.0 }
 0x990   :  { %v1746_v61 = vsel %vm192_vm1, %v1744_v60, 0.0  ;;  %v2015_v60 = vld [vmem:[#allocation7] sm:$0xff] }
 0x991   :  { %1747 = vadd.xlane.f32.xlu0 %v1746_v61 }
 0x995   :  { %1750 = vadd.xlane.f32.xlu0 %v1749_v0 }
 0xa1e   :  { %v1748_v17 = vpop.xlane.xlu0 %1747 }
 0xa1f   :  { %v1752_v19 = vmul.f32 0.03125, %v1748_v17 }
 0xa21   :  { %v1754_v20 = vadd.f32 1e-05, %v1752_v19 }
 0xa22   :  { %v1751_v21 = vpop.xlane.xlu0 %1750 }
 0xa23   :  { %2494 = vrsqrt.f32 %v1754_v20  ;;  %v1753_v22 = vmul.f32 0.03125, %v1751_v21 }
 0xa25   :  { %v1755_v23 = vadd.f32 1e-05, %v1753_v22 }
 0xa27   :  { %2496 = vrsqrt.f32 %v1755_v23 }
 0xa2d   :  { %v2495_v24 = vpop.eup %2494 }
 0xa2e   :  { %v1758_v25 = vmul.f32 %v2495_v24, %v1742_v59 }
 0xa30   :  { %v1767_v27 = vmul.f32 %v2166_v13, %v1758_v25 }
 0xa31   :  { %v2497_v28 = vpop.eup %2496 }
 0xa32   :  { %v1759_v29 = vmul.f32 %v2497_v28, %v1743_v58  ;;  %v1776_v30 = vadd.f32 %v2167_v26, %v1767_v27 }
 0xa34   :  { %v1768_v31 = vmul.f32 %v2166_v13, %v1759_v29  ;;  %2363 = vmatprep.mubr.msk.f32.mxu0 %vm192_vm1, %v1776_v30 }
 0xa36   :  { %v1777_v32 = vadd.f32 %v2167_v26, %v1768_v31 }
 0xa38   :  { %2364 = vmatmul.mubr.msk.f32.vlgmr.msra.gmra.mrb[22].mxu0 %vm192_vm1, %v1777_v32 }
 0xa39   :  { %2389 = vmatprep.mubr.msk.f32.mxu0 %vm99_vm0, %v2015_v60 }
 0xb0b   :  { %v2365_v37 = vpop.f32.mrb[22].mxu0 }
 0xb0c   :  { %v1867_v38 = vadd.f32 %v2365_v37, %v2168_v36  ;;  %v1861_v39 = vpop.f32.mrb[23].mxu0 }
 0xb0d   :  { %v1862_v40 = vadd.f32 %v2168_v36, %v1861_v39 }
 0xb0e   :  { %v1871_v42 = vmax.f32 %v1867_v38, 0.0 }
 0xb0f   :  { %v1870_v41 = vmax.f32 %v1862_v40, 0.0 }
 0xb11   :  { %2382 = vmatprep.mubr.msk.f32.mxu1 %vm1887_vm5, %v1870_v41 }
 0xb12   :  { %2383 = vmatmul.mubr.msk.f32.vlgmr.msra.gmra.mrb[16].mxu1 %vm1887_vm5, %v1871_v42 }
 0xbe5   :  { %v2384_v45 = vpop.f32.mrb[16].mxu1 }
 0xbe6   :  { %v1966_v46 = vadd.f32 %v2384_v45, %v2171_v43  ;;  %v1960_v47 = vpop.f32.mrb[17].mxu1 }
 0xbe7   :  { %v1961_v48 = vadd.f32 %v2171_v43, %v1960_v47 }
 0xbe8   :  { %v1970_v49 = vadd.f32 %v1966_v46, %v1777_v32 }
 0xbe9   :  { %v1969_v62 = vadd.f32 %v1961_v48, %v1776_v30 }
 0xbea   :  { %v1974_v50 = vsel %vm192_vm1, %v1970_v49, 0.0 }
 0xbeb   :  { %1975 = vadd.xlane.f32.xlu0 %v1974_v50  ;;  %v1971_v51 = vsel %vm192_vm1, %v1969_v62, 0.0 }
 0xbec   :  { %1972 = vadd.xlane.f32.xlu1 %v1971_v51 }
 0xc78   :  { %v1976_v52 = vpop.xlane.xlu0 %1975 }
 0xc79   :  { %v1978_v18 = vmul.f32 0.03125, %v1976_v52  ;;  %v1973_v53 = vpop.xlane.xlu1 %1972 }
 0xc7a   :  { %v1977_v54 = vmul.f32 0.03125, %v1973_v53 }
 0xc7b   :  { %v1980_v55 = vsub.f32 %v1970_v49, %v1978_v18 }
 0xc7c   :  { %v1979_v16 = vsub.f32 %v1969_v62, %v1977_v54 }
 0xc7d   :  { %v1982_v56 = vmul.f32 %v1980_v55, %v1980_v55 }
 0xc7e   :  { %v1981_v57 = vmul.f32 %v1979_v16, %v1979_v16 }
 0xc7f   :  { %v1986_v58 = vsel %vm192_vm1, %v1982_v56, 0.0 }
 0xc80   :  { %1987 = vadd.xlane.f32.xlu0 %v1986_v58  ;;  %v1983_v59 = vsel %vm192_vm1, %v1981_v57, 0.0 }
 0xc81   :  { %1984 = vadd.xlane.f32.xlu1 %v1983_v59 }
 0xd0d   :  { %v1988_v61 = vpop.xlane.xlu0 %1987 }
 0xd0e   :  { %v1990_v63 = vmul.f32 0.03125, %v1988_v61  ;;  %v1985_v0 = vpop.xlane.xlu1 %1984 }
 0xd0f   :  { %v1989_v1 = vmul.f32 0.03125, %v1985_v0 }
 0xd10   :  { %v1992_v2 = vadd.f32 1e-05, %v1990_v63 }
 0xd11   :  { %v1991_v3 = vadd.f32 1e-05, %v1989_v1 }
 0xd12   :  { %2498 = vrsqrt.f32 %v1992_v2 }
 0xd13   :  { %2500 = vrsqrt.f32 %v1991_v3 }
 0xd1c   :  { %v2499_v4 = vpop.eup %2498 }
 0xd1d   :  { %v2501_v6 = vpop.eup %2500  ;;  %v1996_v7 = vmul.f32 %v2499_v4, %v1980_v55 }
 0xd1e   :  { %v1995_v8 = vmul.f32 %v2501_v6, %v1979_v16 }
 0xd1f   :  { %v2005_v10 = vmul.f32 %v2174_v5, %v1996_v7 }
 0xd20   :  { %v2004_v44 = vmul.f32 %v2174_v5, %v1995_v8 }
 0xd21   :  { %v2014_v11 = vadd.f32 %v2175_v9, %v2005_v10 }
 0xd22   :  { %v2013_v12 = vadd.f32 %v2175_v9, %v2004_v44 }
 0xd24   :  { %v2436_v14 = vpack.c.bf16 %v2014_v11, %v2013_v12 }
 0xd26   :  { %2437 = vmatprep.subr.bf16.mxu0 %v2436_v14 }
 0xd27   :  { %2439 = vmatpush3.bf16.msra.mxu0 %v2436_v14 }
 0xd2a   :  { %2390 = vmatmul.mubr.msk.f32.vlgmr.msra.gmra.mrb[24].mxu0 %vm99_vm0, %v2016_v15 }
 0xd2b   :  { %2579 = shalt.err (!%p2576_p0)
}
 0xd2c   :  { %s2580_s30 = scalar_lea.hbm %s3076_s16, 256 }
 0xd2d   :  { %p2581_p1 = scmp.ne.s32.totalorder %s3076_s16, %s2580_s30  ;;  %p2584_p2 = scmp.lt.u32.totalorder %s2580_s30, %s3076_s16 }
 0xd2f   :  { %p2586_p3 = pnand %p2584_p2, %p2581_p1 }
 0xd31   :  { %2589 = shalt.err (!%p2586_p3)
}
 0xd32   :  { %2123 = dma.vmem_to_hbm [thread:$0]  %s2118_s28, 256, %s3076_s16, [#allocation10], %s2622_s18, %s2622_s18, %s2623_s19  }
 0xd33   :  { %s2641_s24 = smov [#allocation8]  }
 0xd34   :  { %s2105_s26 = sshll.u32 %s2641_s24, 4  ;;  %s2106_s26 = int_to_ptr.vmem [resolvable:$true] %s2105_s26 }
 0xd35   :  { %s2590_s1 = scalar_lea.vmem %s2106_s26, 256  ;;  %p2595_p5 = scmp.lt.s32.totalorder %s2106_s26, %s2106_s26 }
 0xd36   :  { %p2591_p4 = scmp.ne.s32.totalorder %s2106_s26, %s2590_s1  ;;  %p2596_p6 = scmp.lt.s32.totalorder %s2590_s1, %s2590_s1 }
 0xd38   :  { %p2597_p7 = por %p2596_p6, %p2595_p5 }
 0xd3a   :  { %p2598_p8 = pnand %p2597_p7, %p2591_p4 }
 0xdfd   :  { %v2391_v17 = vpop.f32.mrb[24].mxu0 }
 0xdfe   :  { %2099 = vst.msk [vmem:[#allocation8 + $0x8] sm:$0xff] %vm192_vm1, %v2391_v17  ;;  %v2089_v19 = vpop.f32.mrb[25].mxu0 }
 0xdff   :  { %2098 = vst.msk [vmem:[#allocation8] sm:$0xff] %vm192_vm1, %v2089_v19 }
 0xe00   :  { %2601 = shalt.err (!%p2598_p8)
}
 0xe01   :  { %s2602_s16 = scalar_lea.hbm %s3075_s15, 256 }
 0xe02   :  { %p2603_p9 = scmp.ne.s32.totalorder %s3075_s15, %s2602_s16  ;;  %p2606_p10 = scmp.lt.u32.totalorder %s2602_s16, %s3075_s15 }
 0xe04   :  { %p2608_p11 = pnand %p2606_p10, %p2603_p9 }
 0xe06   :  { %2611 = shalt.err (!%p2608_p11)
}
 0xe07   :  { %2111 = dma.vmem_to_hbm [thread:$0]  %s2106_s26, 256, %s3075_s15, [#allocation4], %s2622_s18, %s2622_s18, %s2623_s19  }
 0xe08   :  { %2616 = dma.done.wait [#allocation4], 256  }
 0xe09   :  { %2617 = vsyncadd [#allocation4], 4294967040 }
 0xe0a   :  { %2618 = dma.done.wait [#allocation10], 256  }
 0xe0b   :  { %2619 = vsyncadd [#allocation10], 4294967040 }
 0xe0c   :  { %2130 = vsyncpa [#allocation3], 1 }
 0xe0d   :  { %2131 = vsyncpa [#allocation6], 1 }
 0xe0e   :  { %2132 = vsyncpa [#allocation4], 1 }
 0xe0f   :  { %2133 = vsyncpa [#allocation10], 1 }

</bundles_post_ra>
